<compile_context>
chip_gen: v7x
topology: tpu7x:2x2x1
jax: 0.10.0
libtpu: 0.0.40
codegen_flags: <defaults>
</compile_context>

<pallas_src>
import math
from functools import partial

import jax
import jax.numpy as jnp
from jax.experimental import pallas as pl
from jax.experimental.pallas import tpu as pltpu


def _make_kernel(D, netwidth, out_dim):
    """All D Linear(+ReLU) layers + sigmoid head fused, for one batch tile."""
    dn = (((1,), (1,)), ((), ()))   # contract dim-1 of both operands -> [out, bt]

    def kernel(conc_ref, lx_ref, s_ref, w0c_ref, whs_ref, b_ref,
               out_ref, stat_ref):
        # One stacked matmul produces every layer's [latent | x] contribution
        # (plus all biases): replaces ~2*(D-1) tiny-K MXU pushes with a single
        # push whose M dimension actually fills the systolic array.
        stat_ref[...] = jax.lax.dot_general(
            s_ref[...], lx_ref[...], dimension_numbers=dn,
            preferred_element_type=jnp.float32) + b_ref[...]

        # Layer 0: conc is the dominant HBM stream (bf16 DMA + bf16 MXU,
        # f32 accumulation); bias/ReLU stay f32.
        z = jax.lax.dot_general(
            w0c_ref[...], conc_ref[...], dimension_numbers=dn,
            preferred_element_type=jnp.float32) + stat_ref[0:netwidth, :]
        h = jnp.maximum(z, 0.0)

        # Hidden layers 1..D-2 and the 3-wide head (layer D-1): only the
        # h-dependent matmul remains; latent/x/bias were precomputed above.
        for i in range(1, D):
            rows = netwidth if i < D - 1 else out_dim
            w_h = whs_ref[(i - 1) * netwidth:(i - 1) * netwidth + rows, :]
            z = (jnp.dot(w_h, h, preferred_element_type=jnp.float32)
                 + stat_ref[i * netwidth:i * netwidth + rows, :])
            if i < D - 1:
                h = jnp.maximum(z, 0.0)

        # Lane-dense [3, batch_tile] store (batch on the 128-lane axis).
        out_ref[...] = (1.0 / (1.0 + jnp.exp(-z))).astype(out_ref.dtype)

    return kernel


def style_mlp_forward(x, conc, latent, weights, biases, *, netwidth,
                      skips=(4,), batch_tile=None, stream_dtype=jnp.bfloat16):
    """Forward pass of StyleMLP_Wild_multilayers.

    x:      [B, x_dim]   (embedded coords + coords)
    conc:   [B, 512]     ('concated')
    latent: [B, vae_latent]
    weights[i]: [out, in] (PyTorch nn.Linear layout), biases[i]: [out]
    Returns rgb: [B, 3] (post-sigmoid).
    """
    B, x_dim = x.shape
    conc_dim = conc.shape[1]
    latent_dim = latent.shape[1]
    D = len(weights)
    assert D >= 2 and len(biases) == D
    out_dim = weights[-1].shape[0]
    total_out = (D - 1) * netwidth + out_dim
    lx_dim = latent_dim + x_dim
    f32 = jnp.float32
    sbytes = jnp.dtype(stream_dtype).itemsize

    # ---- split + stack weights (activations are never concatenated in HBM) --
    # Layer 0 columns: [conc | x | latent];  layers i>=1: [h | latent](+[x] skip)
    w0 = weights[0].astype(f32)
    assert w0.shape == (netwidth, conc_dim + x_dim + latent_dim)
    w0_conc = w0[:, :conc_dim].astype(stream_dtype)
    w0_x = w0[:, conc_dim:conc_dim + x_dim]
    w0_l = w0[:, conc_dim + x_dim:]

    s_rows = [jnp.concatenate([w0_l, w0_x], axis=1)]        # S columns: [l | x]
    wh_rows = []
    for i in range(1, D):
        w = weights[i].astype(f32)
        odim = netwidth if i < D - 1 else out_dim
        wh_rows.append(w[:, :netwidth])
        w_l = w[:, netwidth:netwidth + latent_dim]
        if i in skips and i < D - 1:
            assert w.shape == (odim, netwidth + latent_dim + x_dim)
            w_x = w[:, netwidth + latent_dim:]
        else:
            assert w.shape == (odim, netwidth + latent_dim)
            w_x = jnp.zeros((odim, x_dim), f32)
        s_rows.append(jnp.concatenate([w_l, w_x], axis=1))
    S = jnp.concatenate(s_rows, axis=0)                      # [total_out, lx_dim]
    WH = jnp.concatenate(wh_rows, axis=0)                    # [(D-2)*nw + 3, nw]
    b_all = jnp.concatenate([b.astype(f32).reshape(-1, 1) for b in biases],
                            axis=0)                          # [total_out, 1]

    # ---- activations stay in native [B, feat] layout; no .T / no pad in HBM --
    # latent & x are tiny next to conc (23 vs 512 cols); fuse them into one
    # stream feeding the stacked static matmul.  conc goes bf16 for the DMA.
    lx = jnp.concatenate([latent.astype(f32), x.astype(f32)], axis=1)
    conc_in = conc.astype(stream_dtype)

    # ---- batch tiling: batch on input sublanes, on output lanes --------------
    if batch_tile is None:
        # >=2 parallel grid steps keep both v7x TensorCores fed; larger tiles
        # amortize the ~0.35us/step overhead on single-TC v5e/v6e (pass
        # batch_tile=1024..2048 there for very large B).
        batch_tile = 512 if B <= 4096 else 1024
    if B <= batch_tile:
        bt = B                                   # single step, full-dim blocks
    else:
        bt = ((batch_tile + 127) // 128) * 128   # lane/sublane aligned tiles
    grid = (pl.cdiv(B, bt),)

    in_specs = [
        pl.BlockSpec((bt, conc_dim), lambda i: (i, 0)),
        pl.BlockSpec((bt, lx_dim), lambda i: (i, 0)),
        pl.BlockSpec(S.shape, lambda i: (0, 0)),
        pl.BlockSpec(w0_conc.shape, lambda i: (0, 0)),
        pl.BlockSpec(WH.shape, lambda i: (0, 0)),
        pl.BlockSpec(b_all.shape, lambda i: (0, 0)),
    ]
    out_specs = pl.BlockSpec((out_dim, bt), lambda i: (0, i))

    flops = 2 * B * sum(int(w.shape[0]) * int(w.shape[1]) for w in weights)
    bytes_accessed = int(B * conc_dim * sbytes + B * lx_dim * 4
                         + B * out_dim * 4
                         + 4 * (int(S.size) + int(WH.size) + int(b_all.size))
                         + int(w0_conc.size) * sbytes)

    rgb_t = pl.pallas_call(
        _make_kernel(D, netwidth, out_dim),
        grid_spec=pltpu.PrefetchScalarGridSpec(
            num_scalar_prefetch=0,
            grid=grid,
            in_specs=in_specs,
            out_specs=out_specs,
            scratch_shapes=[pltpu.VMEM((total_out, bt), jnp.float32)]),
        out_shape=jax.ShapeDtypeStruct((out_dim, B), jnp.float32),
        compiler_params=pltpu.CompilerParams(
            dimension_semantics=("parallel",),
            vmem_limit_bytes=32 * 1024 * 1024),
        cost_estimate=pl.CostEstimate(
            flops=flops,
            transcendentals=B * out_dim,
            bytes_accessed=bytes_accessed),
    )(conc_in, lx, S, w0_conc, WH, b_all)

    return rgb_t.T        # [B, 3]


def init_params(key, x_dim, conc_dim, latent_dim, netwidth, D, skips=(4,)):
    """Mirror the module __init__ layer shapes and nn.Linear default init."""
    input_ch = x_dim + conc_dim + latent_dim
    in_dims = []
    dim = input_ch
    for i in range(D - 1):
        if i in skips:
            dim += x_dim
        in_dims.append(dim)
        dim = netwidth + latent_dim
    in_dims.append(netwidth + latent_dim)
    out_dims = [netwidth] * (D - 1) + [3]

    weights, biases = [], []
    keys = jax.random.split(key, 2 * D)
    for li in range(D):
        fan_in, fan_out = in_dims[li], out_dims[li]
        bound = 1.0 / math.sqrt(fan_in)
        weights.append(jax.random.uniform(
            keys[2 * li], (fan_out, fan_in), jnp.float32, -bound, bound))
        biases.append(jax.random.uniform(
            keys[2 * li + 1], (fan_out,), jnp.float32, -bound, bound))
    return weights, biases


def reference_forward(x, conc, latent, weights, biases, D, skips=(4,)):
    """Pure-JAX mirror of the PyTorch forward (f32, highest matmul precision)."""
    hp = jax.lax.Precision.HIGHEST
    h = jnp.concatenate([conc, x], axis=-1)
    for i in range(D - 1):
        h = jnp.concatenate([h, latent], axis=-1)
        if i in skips:
            h = jnp.concatenate([h, x], axis=-1)
        h = jnp.maximum(jnp.dot(h, weights[i].T, precision=hp) + biases[i], 0.0)
    h = jnp.concatenate([h, latent], axis=-1)
    h = jnp.dot(h, weights[-1].T, precision=hp) + biases[-1]
    return jax.nn.sigmoid(h)


if __name__ == "__main__":
    # Small but structurally faithful hyper-parameters:
    embed_freq_coor = 2
    x_dim = embed_freq_coor * 3 * 2 + 3          # 15
    conc_dim = 256 + 256                         # 512 (hardcoded in the module)
    vae_latent = 8
    netwidth = 32
    style_D = 6                                  # >=6 so the skip at layer 4 runs
    B = 1024                                     # 2 parallel grid steps of 512

    key = jax.random.PRNGKey(0)
    kx, kc, kl, kp = jax.random.split(key, 4)
    x = jax.random.normal(kx, (B, x_dim), jnp.float32)
    conc = jax.random.normal(kc, (B, conc_dim), jnp.float32)
    latent = jax.random.normal(kl, (B, vae_latent), jnp.float32)
    weights, biases = init_params(kp, x_dim, conc_dim, vae_latent,
                                  netwidth, style_D)

    rgb_ref = reference_forward(x, conc, latent, weights, biases, style_D)

    # Fast path: bf16 streaming of conc (halves the dominant HBM read).
    fwd = jax.jit(partial(style_mlp_forward, netwidth=netwidth))
    rgb = jax.block_until_ready(fwd(x, conc, latent, weights, biases))
    assert rgb.shape == (B, 3)
    assert bool(jnp.all(jnp.isfinite(rgb)))
    err_bf16 = float(jnp.max(jnp.abs(rgb - rgb_ref)))
    assert err_bf16 < 2e-2, f"bf16-stream max abs err {err_bf16}"

    # Structural exactness check: same kernel with f32 streaming.
    fwd_f32 = jax.jit(partial(style_mlp_forward, netwidth=netwidth,
                              stream_dtype=jnp.float32))
    rgb_f32 = jax.block_until_ready(fwd_f32(x, conc, latent, weights, biases))
    err_f32 = float(jnp.max(jnp.abs(rgb_f32 - rgb_ref)))
    assert err_f32 < 1e-4, f"f32 max abs err {err_f32}"

    print("KERNEL_OK")
</pallas_src>

<mosaic_0001>
module attributes {stable_mosaic.version = 11 : i64} {
  func.func @kernel(%arg0: i32, %arg1: memref<512x512xbf16, #tpu.memory_space<vmem>>, %arg2: memref<512x23xf32, #tpu.memory_space<vmem>>, %arg3: memref<163x23xf32, #tpu.memory_space<vmem>>, %arg4: memref<32x512xbf16, #tpu.memory_space<vmem>>, %arg5: memref<131x32xf32, #tpu.memory_space<vmem>>, %arg6: memref<163x1xf32, #tpu.memory_space<vmem>>, %arg7: memref<3x512xf32, #tpu.memory_space<vmem>>, %arg8: memref<163x512xf32, #tpu.memory_space<vmem>>) attributes {dimension_semantics = [#tpu.dimension_semantics<parallel>], iteration_bounds = array<i64: 2>, scalar_prefetch = 0 : i64, scratch_operands = 1 : i64, tpu.core_type = #tpu.core_type<tc>, window_params = [{transform_indices = @transform_0, window_bounds = array<i64: 512, 512>}, {transform_indices = @transform_1, window_bounds = array<i64: 512, 23>}, {pipeline_mode = #tpu.pipeline_mode<synchronous>, transform_indices = @transform_2, window_bounds = array<i64: 163, 23>}, {pipeline_mode = #tpu.pipeline_mode<synchronous>, transform_indices = @transform_3, window_bounds = array<i64: 32, 512>}, {pipeline_mode = #tpu.pipeline_mode<synchronous>, transform_indices = @transform_4, window_bounds = array<i64: 131, 32>}, {pipeline_mode = #tpu.pipeline_mode<synchronous>, transform_indices = @transform_5, window_bounds = array<i64: 163, 1>}, {transform_indices = @transform_6, window_bounds = array<i64: 3, 512>}]} {
    %c0 = arith.constant 0 : index
    %c0_0 = arith.constant 0 : index
    %0 = vector.load %arg3[%c0, %c0_0] : memref<163x23xf32, #tpu.memory_space<vmem>>, vector<163x23xf32>
    %c0_1 = arith.constant 0 : index
    %c0_2 = arith.constant 0 : index
    %1 = vector.load %arg2[%c0_1, %c0_2] : memref<512x23xf32, #tpu.memory_space<vmem>>, vector<512x23xf32>
    %cst = arith.constant dense<0.000000e+00> : vector<163x512xf32>
    %2 = tpu.matmul %0, %1, %cst {dimension_numbers = #tpu.dot_dimension_numbers<[1], [1], [0], [0], [0, 0, 1, 0], [], []>} : vector<163x23xf32>, vector<512x23xf32>, vector<163x512xf32> -> vector<163x512xf32>
    %c0_3 = arith.constant 0 : index
    %c0_4 = arith.constant 0 : index
    %3 = vector.load %arg6[%c0_3, %c0_4] : memref<163x1xf32, #tpu.memory_space<vmem>>, vector<163x1xf32>
    %4 = vector.broadcast %3 : vector<163x1xf32> to vector<163x512xf32>
    %5 = arith.addf %2, %4 : vector<163x512xf32>
    %c0_5 = arith.constant 0 : index
    %c0_6 = arith.constant 0 : index
    %6 = vector.load %arg8[%c0_5, %c0_6] : memref<163x512xf32, #tpu.memory_space<vmem>>, vector<163x512xf32>
    tpu.vector_store %arg8[%c0_5, %c0_6], %5 {strides = array<i32>} : memref<163x512xf32, #tpu.memory_space<vmem>>, vector<163x512xf32>,
    %c0_7 = arith.constant 0 : index
    %c0_8 = arith.constant 0 : index
    %7 = vector.load %arg4[%c0_7, %c0_8] : memref<32x512xbf16, #tpu.memory_space<vmem>>, vector<32x512xbf16>
    %c0_9 = arith.constant 0 : index
    %c0_10 = arith.constant 0 : index
    %8 = vector.load %arg1[%c0_9, %c0_10] : memref<512x512xbf16, #tpu.memory_space<vmem>>, vector<512x512xbf16>
    %cst_11 = arith.constant dense<0.000000e+00> : vector<32x512xf32>
    %9 = tpu.matmul %7, %8, %cst_11 {dimension_numbers = #tpu.dot_dimension_numbers<[1], [1], [0], [0], [0, 0, 1, 0], [], []>} : vector<32x512xbf16>, vector<512x512xbf16>, vector<32x512xf32> -> vector<32x512xf32>
    %c0_12 = arith.constant 0 : index
    %c0_13 = arith.constant 0 : index
    %10 = vector.load %arg8[%c0_12, %c0_13] : memref<163x512xf32, #tpu.memory_space<vmem>>, vector<32x512xf32>
    %11 = arith.addf %9, %10 : vector<32x512xf32>
    %cst_14 = arith.constant 0.000000e+00 : f32
    %12 = vector.broadcast %cst_14 : f32 to vector<32x512xf32>
    %13 = arith.maximumf %11, %12 : vector<32x512xf32>
    %c0_15 = arith.constant 0 : index
    %c0_16 = arith.constant 0 : index
    %14 = vector.load %arg5[%c0_15, %c0_16] : memref<131x32xf32, #tpu.memory_space<vmem>>, vector<32x32xf32>
    %cst_17 = arith.constant dense<0.000000e+00> : vector<32x512xf32>
    %15 = tpu.matmul %14, %13, %cst_17 {dimension_numbers = #tpu.dot_dimension_numbers<[1], [0], [0], [1], [0, 0, 1, 1], [], []>} : vector<32x32xf32>, vector<32x512xf32>, vector<32x512xf32> -> vector<32x512xf32>
    %c32 = arith.constant 32 : index
    %c0_18 = arith.constant 0 : index
    %16 = vector.load %arg8[%c32, %c0_18] : memref<163x512xf32, #tpu.memory_space<vmem>>, vector<32x512xf32>
    %17 = arith.addf %15, %16 : vector<32x512xf32>
    %cst_19 = arith.constant 0.000000e+00 : f32
    %18 = vector.broadcast %cst_19 : f32 to vector<32x512xf32>
    %19 = arith.maximumf %17, %18 : vector<32x512xf32>
    %c32_20 = arith.constant 32 : index
    %c0_21 = arith.constant 0 : index
    %20 = vector.load %arg5[%c32_20, %c0_21] : memref<131x32xf32, #tpu.memory_space<vmem>>, vector<32x32xf32>
    %cst_22 = arith.constant dense<0.000000e+00> : vector<32x512xf32>
    %21 = tpu.matmul %20, %19, %cst_22 {dimension_numbers = #tpu.dot_dimension_numbers<[1], [0], [0], [1], [0, 0, 1, 1], [], []>} : vector<32x32xf32>, vector<32x512xf32>, vector<32x512xf32> -> vector<32x512xf32>
    %c64 = arith.constant 64 : index
    %c0_23 = arith.constant 0 : index
    %22 = vector.load %arg8[%c64, %c0_23] : memref<163x512xf32, #tpu.memory_space<vmem>>, vector<32x512xf32>
    %23 = arith.addf %21, %22 : vector<32x512xf32>
    %cst_24 = arith.constant 0.000000e+00 : f32
    %24 = vector.broadcast %cst_24 : f32 to vector<32x512xf32>
    %25 = arith.maximumf %23, %24 : vector<32x512xf32>
    %c64_25 = arith.constant 64 : index
    %c0_26 = arith.constant 0 : index
    %26 = vector.load %arg5[%c64_25, %c0_26] : memref<131x32xf32, #tpu.memory_space<vmem>>, vector<32x32xf32>
    %cst_27 = arith.constant dense<0.000000e+00> : vector<32x512xf32>
    %27 = tpu.matmul %26, %25, %cst_27 {dimension_numbers = #tpu.dot_dimension_numbers<[1], [0], [0], [1], [0, 0, 1, 1], [], []>} : vector<32x32xf32>, vector<32x512xf32>, vector<32x512xf32> -> vector<32x512xf32>
    %c96 = arith.constant 96 : index
    %c0_28 = arith.constant 0 : index
    %28 = vector.load %arg8[%c96, %c0_28] : memref<163x512xf32, #tpu.memory_space<vmem>>, vector<32x512xf32>
    %29 = arith.addf %27, %28 : vector<32x512xf32>
    %cst_29 = arith.constant 0.000000e+00 : f32
    %30 = vector.broadcast %cst_29 : f32 to vector<32x512xf32>
    %31 = arith.maximumf %29, %30 : vector<32x512xf32>
    %c96_30 = arith.constant 96 : index
    %c0_31 = arith.constant 0 : index
    %32 = vector.load %arg5[%c96_30, %c0_31] : memref<131x32xf32, #tpu.memory_space<vmem>>, vector<32x32xf32>
    %cst_32 = arith.constant dense<0.000000e+00> : vector<32x512xf32>
    %33 = tpu.matmul %32, %31, %cst_32 {dimension_numbers = #tpu.dot_dimension_numbers<[1], [0], [0], [1], [0, 0, 1, 1], [], []>} : vector<32x32xf32>, vector<32x512xf32>, vector<32x512xf32> -> vector<32x512xf32>
    %c128 = arith.constant 128 : index
    %c0_33 = arith.constant 0 : index
    %34 = vector.load %arg8[%c128, %c0_33] : memref<163x512xf32, #tpu.memory_space<vmem>>, vector<32x512xf32>
    %35 = arith.addf %33, %34 : vector<32x512xf32>
    %cst_34 = arith.constant 0.000000e+00 : f32
    %36 = vector.broadcast %cst_34 : f32 to vector<32x512xf32>
    %37 = arith.maximumf %35, %36 : vector<32x512xf32>
    %c128_35 = arith.constant 128 : index
    %c0_36 = arith.constant 0 : index
    %38 = vector.load %arg5[%c128_35, %c0_36] : memref<131x32xf32, #tpu.memory_space<vmem>>, vector<3x32xf32>
    %cst_37 = arith.constant dense<0.000000e+00> : vector<3x512xf32>
    %39 = tpu.matmul %38, %37, %cst_37 {dimension_numbers = #tpu.dot_dimension_numbers<[1], [0], [0], [1], [0, 0, 1, 1], [], []>} : vector<3x32xf32>, vector<32x512xf32>, vector<3x512xf32> -> vector<3x512xf32>
    %c160 = arith.constant 160 : index
    %c0_38 = arith.constant 0 : index
    %40 = vector.load %arg8[%c160, %c0_38] : memref<163x512xf32, #tpu.memory_space<vmem>>, vector<3x512xf32>
    %41 = arith.addf %39, %40 : vector<3x512xf32>
    %cst_39 = arith.constant 0.000000e+00 : f32
    %42 = vector.broadcast %cst_39 : f32 to vector<3x512xf32>
    %43 = arith.subf %42, %41 : vector<3x512xf32>
    %44 = math.exp %43 : vector<3x512xf32>
    %cst_40 = arith.constant 1.000000e+00 : f32
    %45 = vector.broadcast %cst_40 : f32 to vector<3x512xf32>
    %46 = arith.addf %45, %44 : vector<3x512xf32>
    %cst_41 = arith.constant 1.000000e+00 : f32
    %47 = vector.broadcast %cst_41 : f32 to vector<3x512xf32>
    %48 = arith.divf %47, %46 : vector<3x512xf32>
    %c0_42 = arith.constant 0 : index
    %c0_43 = arith.constant 0 : index
    %49 = vector.load %arg7[%c0_42, %c0_43] : memref<3x512xf32, #tpu.memory_space<vmem>>, vector<3x512xf32>
    tpu.vector_store %arg7[%c0_42, %c0_43], %48 {strides = array<i32>} : memref<3x512xf32, #tpu.memory_space<vmem>>, vector<3x512xf32>,
    return
  }
  func.func @transform_0(%arg0: i32) -> (i32, i32) {
    %c0_i32 = arith.constant 0 : i32
    %c0_i32_0 = arith.constant 0 : i32
    return %arg0, %c0_i32 : i32, i32
  }
  func.func @transform_1(%arg0: i32) -> (i32, i32) {
    %c0_i32 = arith.constant 0 : i32
    %c0_i32_0 = arith.constant 0 : i32
    return %arg0, %c0_i32 : i32, i32
  }
  func.func @transform_2(%arg0: i32) -> (i32, i32) {
    %c0_i32 = arith.constant 0 : i32
    %c0_i32_0 = arith.constant 0 : i32
    %c0_i32_1 = arith.constant 0 : i32
    return %c0_i32, %c0_i32_0 : i32, i32
  }
  func.func @transform_3(%arg0: i32) -> (i32, i32) {
    %c0_i32 = arith.constant 0 : i32
    %c0_i32_0 = arith.constant 0 : i32
    %c0_i32_1 = arith.constant 0 : i32
    return %c0_i32, %c0_i32_0 : i32, i32
  }
  func.func @transform_4(%arg0: i32) -> (i32, i32) {
    %c0_i32 = arith.constant 0 : i32
    %c0_i32_0 = arith.constant 0 : i32
    %c0_i32_1 = arith.constant 0 : i32
    return %c0_i32, %c0_i32_0 : i32, i32
  }
  func.func @transform_5(%arg0: i32) -> (i32, i32) {
    %c0_i32 = arith.constant 0 : i32
    %c0_i32_0 = arith.constant 0 : i32
    %c0_i32_1 = arith.constant 0 : i32
    return %c0_i32, %c0_i32_0 : i32, i32
  }
  func.func @transform_6(%arg0: i32) -> (i32, i32) {
    %c0_i32 = arith.constant 0 : i32
    %c0_i32_0 = arith.constant 0 : i32
    return %c0_i32, %arg0 : i32, i32
  }
}

</mosaic_0001>

<bundles_post_ra>
// kernel: style_mlp_forward.1
= control target key start
LH: loop header
LB: loop body
LE: loop exit
PB: predicated region body
PF: predicated region fallthrough
CT: control target
= control target key end

     0   :  { %11 = vsyncpa [#allocation4], 0  ;;  %s5601_s0 = inlined_call_operand.vmem [shape: bf16[1024,512], index: 0, kind: input, shape index: {}]   ;;  %s5602_s1 = inlined_call_operand.vmem [shape: f32[1024,23], index: 1, kind: input, shape index: {}]   ;;  %s5603_s2 = inlined_call_operand.vmem [shape: f32[163,23], index: 2, kind: input, shape index: {}]   ;;  %s5604_s3 = inlined_call_operand.vmem [shape: bf16[32,512], index: 3, kind: input, shape index: {}]   ;;  %s5605_s4 = inlined_call_operand.vmem [shape: f32[131,32], index: 4, kind: input, shape index: {}]   ;;  %s5606_s5 = inlined_call_operand.vmem [shape: f32[163,1], index: 5, kind: input, shape index: {}]   ;;  %s5607_s6 = inlined_call_operand.hbm [shape: f32[3,1024], index: 6, kind: output, shape index: {}]  }
   0x1   :  { %13 = vsyncpa [#allocation4 + $0x1], 0  ;;  %s4684_s21 = smov 0   ;;  %s4686_s22 = smov 0  }
   0x2   :  { %s4688_s23 = smov 0   ;;  %s4690_s24 = smov 0  }
   0x3 LB: > { %s4705_s25 = sadd.s32 4294967295, %s4644_s24   ;;  %s3446_s26 = sadd.s32 4294967294, %s4644_s24   ;;  %s4644_s24 = sphi %s4690_s24, %s5615_s24   ;;  %s4640_s23 = sphi %s4688_s23, %s5614_s23   ;;  %s4636_s22 = sphi %s4686_s22, %s5613_s22   ;;  %s4632_s21 = sphi %s4684_s21, %s5612_s21  }
   0x4   : > { %s4709_s27 = sadd.s32 1, %s4644_s24   ;;  %s162_s28 = sadd.s32 1, %s4640_s23 }
   0x5   : > { %s159_s29 = ssub.s32 %s4644_s24, %s4709_s27  ;;  %p172_p0 = scmp.ne.s32.totalorder %s4640_s23, %s4636_s22 }
   0x6   : > { %p160_p1 = scmp.eq.s32.totalorder %s159_s29, 0  ;;  %p173_p2 = scmp.eq.s32.totalorder %s4705_s25, 1 }
   0x7   : > { %p178_p3 = scmp.ne.s32.totalorder %s4636_s22, %s4632_s21  ;;  %p179_p4 = scmp.eq.s32.totalorder %s3446_s26, 1 }
   0x8   : > { %s4720_s30 = scalar_select %p160_p1, %s4640_s23, %s162_s28  }
   0x9   : > { %p4722_p5 = por %p173_p2, %p172_p0  ;;  %p4726_p6 = por %p179_p4, %p178_p3 }
   0xa   : > { %p3449_p7 = scmp.ge.s32.totalorder %s4644_s24, 1  ;;  %p228_p8 = scmp.lt.s32.totalorder %s4644_s24, 3 }
   0xc   : > { %p229_p9 = pnand %p3449_p7, %p228_p8 }
   0xd   : > { %s3451_s9 = sshll.u32 (!%p229_p9), %s4705_s25, 6  ;;  %vm489_vm0 = vcmask (!%p229_p9), 187392   ;;  %v4736_v0 = vld [vmem:[%s5603_s2] sm:$0xff] (!%p229_p9)  ;;  %v4646_v50 = vmov (!%p229_p9), 0   ;;  %v280_v1 = vld [vmem:[%s5603_s2 + $0x10] sm:$0xff] (!%p229_p9)  ;;  %vm2291_vm2 = vcmask (!%p229_p9), 261120  }
   0xe   : > { %232 = sbr.rel (%p229_p9) target bundleno = 1782 (0x6f6), region = 44  ;;  %p265_p10 = scmp.lt.s32.totalorder (!%p229_p9), %s3451_s9, 127  ;;  %3771 = vmatprep.mubr.msk.f32.mxu0 (!%p229_p9), %vm489_vm0, %v4736_v0  ;;  %3845 = vmatprep.mubr.msk.f32.mxu1 (!%p229_p9), %vm489_vm0, %v4736_v0  ;;  %vm4752_vm1 = vmpackc.low (!%p229_p9), %vm489_vm0, %vm489_vm0 }
   0xf   : > { %4360 = vset.pattern.permute.xlu0 (!%p229_p9), %v4646_v50  ;;  %4361 = vset.pattern.permute.xlu1 (!%p229_p9), %v4646_v50  ;;  %v282_v50 = vld [vmem:[%s5603_s2 + $0x20] sm:$0xff] (!%p229_p9)  ;;  %s261_s29 = sand.u32 (!%p229_p9), 1, %s4636_s22   ;;  %s3738_s11 = sshll.u32 (!%p229_p9), %s4705_s25, 8 }
  0x10   : > { %s4648_s25 = smov (!%p229_p9), [#allocation3]  }
  0x11   : > { %s4586_s18 = sshll.u32 (!%p229_p9), %s4648_s25, 4  ;;  %s4587_s18 = int_to_ptr.vmem [resolvable:$false] %s4586_s18 }
  0x15   : > { %s5617_s9 = smov (!%p265_p10, %s3451_s9), 127 }
  0x16   : > { %s3455_s12 = sshll.u32 %s5617_s9, 3  ;;  %s3737_s16 = sshll.u32 %s5617_s9, 4 }
  0x17   : > { %s4748_s15 = scalar_lea.vmem %s5602_s1, %s3455_s12  ;;  %s4808_s19 = scalar_lea.vmem %s5601_s0, %s3737_s16 }
  0x18   : > { %v315_v2 = vld [vmem:[%s4748_s15 + $0x80] sm:$0xff]  ;;  %v316_v3 = vld [vmem:[%s4748_s15 + $0x88] sm:$0xff]  ;;  %v317_v13 = vld [vmem:[%s4748_s15 + $0x90] sm:$0xff]  ;;  %s3450_s9 = sshll.u32 %s261_s29, 4  ;;  %s3361_s16 = scalar_lea.sflag [#allocation4], %s261_s29 }
  0x19   : > { %v347_v4 = vld [vmem:[%s4748_s15 + $0x180] sm:$0xff]  ;;  %v3887_v5 = vpack.c.bf16 %v316_v3, %v315_v2  ;;  %v348_v6 = vld [vmem:[%s4748_s15 + $0x188] sm:$0xff]  ;;  %v318_v15 = vld [vmem:[%s4748_s15 + $0x98] sm:$0xff]  ;;  %s263_s10 = scalar_lea.vmem [#allocation3], %s3450_s9 }
  0x1a   : > { %v299_v7 = vld [vmem:[%s4748_s15] sm:$0xff]  ;;  %v300_v8 = vld [vmem:[%s4748_s15 + $0x8] sm:$0xff]  ;;  %v3935_v9 = vpack.c.bf16 %v348_v6, %v347_v4  ;;  %v349_v16 = vld [vmem:[%s4748_s15 + $0x190] sm:$0xff]  ;;  %v3893_v18 = vpack.c.bf16 %v318_v15, %v317_v13  ;;  %s3375_s12 = sshll.u32 %s263_s10, 4  ;;  %s5559_s12 = int_to_ptr.vmem [resolvable:$true] %s3375_s12 }
  0x1b   : > { %v3890_v10 = vpack.c.bf16 %v300_v8, %v299_v7  ;;  %v331_v11 = vld [vmem:[%s4748_s15 + $0x100] sm:$0xff]  ;;  %v332_v12 = vld [vmem:[%s4748_s15 + $0x108] sm:$0xff]  ;;  %3889 = vmatprep.subr.msk.bf16.mxu0 %vm4752_vm1, %v3887_v5  ;;  %v350_v17 = vld [vmem:[%s4748_s15 + $0x198] sm:$0xff]  ;;  %s4582_s17 = scalar_lea.vmem %s5559_s12, 256  ;;  %p4589_p0 = scmp.lt.s32.totalorder %s5559_s12, %s4587_s18 }
  0x1c   : > { %v3938_v14 = vpack.c.bf16 %v332_v12, %v331_v11  ;;  %3937 = vmatprep.subr.msk.bf16.mxu1 %vm4752_vm1, %v3935_v9  ;;  %v3941_v19 = vpack.c.bf16 %v350_v17, %v349_v16  ;;  %v301_v20 = vld [vmem:[%s4748_s15 + $0x10] sm:$0xff]  ;;  %v302_v21 = vld [vmem:[%s4748_s15 + $0x18] sm:$0xff]  ;;  %v319_v24 = vld [vmem:[%s4748_s15 + $0xa0] sm:$0xff]  ;;  %p4583_p11 = scmp.ne.s32.totalorder %s5559_s12, %s4582_s17 }
  0x1d   : > { %3892 = vmatpush3.bf16.xpose.msk.msra.mxu0 %vm4752_vm1, %v3890_v10  ;;  %v333_v22 = vld [vmem:[%s4748_s15 + $0x110] sm:$0xff]  ;;  %v334_v23 = vld [vmem:[%s4748_s15 + $0x118] sm:$0xff]  ;;  %v320_v25 = vld [vmem:[%s4748_s15 + $0xa8] sm:$0xff]  ;;  %v3896_v28 = vpack.c.bf16 %v302_v21, %v301_v20 }
  0x1e   : > { %3940 = vmatpush3.bf16.xpose.msk.msra.mxu1 %vm4752_vm1, %v3938_v14  ;;  %3895 = vmatprep.subr.msk.bf16.mxu0 %vm4752_vm1, %v3893_v18  ;;  %v351_v26 = vld [vmem:[%s4748_s15 + $0x1a0] sm:$0xff]  ;;  %v352_v27 = vld [vmem:[%s4748_s15 + $0x1a8] sm:$0xff]  ;;  %v3944_v29 = vpack.c.bf16 %v334_v23, %v333_v22  ;;  %v3899_v30 = vpack.c.bf16 %v320_v25, %v319_v24  ;;  %v321_v36 = vld [vmem:[%s4748_s15 + $0xb0] sm:$0xff]  ;;  %p4584_p12 = pnand %p4583_p11, %p4722_p5 }
  0x1f   : > { %3943 = vmatprep.subr.msk.bf16.mxu1 %vm4752_vm1, %v3941_v19  ;;  %v3947_v31 = vpack.c.bf16 %v352_v27, %v351_v26  ;;  %v303_v32 = vld [vmem:[%s4748_s15 + $0x20] sm:$0xff]  ;;  %v304_v33 = vld [vmem:[%s4748_s15 + $0x28] sm:$0xff]  ;;  %v322_v37 = vld [vmem:[%s4748_s15 + $0xb8] sm:$0xff] }
  0x20   : > { %v335_v34 = vld [vmem:[%s4748_s15 + $0x120] sm:$0xff]  ;;  %v336_v35 = vld [vmem:[%s4748_s15 + $0x128] sm:$0xff]  ;;  %v353_v38 = vld [vmem:[%s4748_s15 + $0x1b0] sm:$0xff]  ;;  %v3902_v40 = vpack.c.bf16 %v304_v33, %v303_v32  ;;  %v3905_v42 = vpack.c.bf16 %v322_v37, %v321_v36  ;;  %p4585_p13 = pneg %p4584_p12 }
  0x21   : > { %v354_v39 = vld [vmem:[%s4748_s15 + $0x1b8] sm:$0xff]  ;;  %v3950_v41 = vpack.c.bf16 %v336_v35, %v335_v34  ;;  %v305_v44 = vld [vmem:[%s4748_s15 + $0x30] sm:$0xff]  ;;  %v323_v48 = vld [vmem:[%s4748_s15 + $0xc0] sm:$0xff] }
  0x22   : > { %v3953_v43 = vpack.c.bf16 %v354_v39, %v353_v38  ;;  %v306_v45 = vld [vmem:[%s4748_s15 + $0x38] sm:$0xff]  ;;  %v337_v46 = vld [vmem:[%s4748_s15 + $0x130] sm:$0xff]  ;;  %v324_v49 = vld [vmem:[%s4748_s15 + $0xc8] sm:$0xff] }
  0x23   : > { %v338_v47 = vld [vmem:[%s4748_s15 + $0x138] sm:$0xff]  ;;  %v355_v51 = vld [vmem:[%s4748_s15 + $0x1c0] sm:$0xff]  ;;  %v356_v52 = vld [vmem:[%s4748_s15 + $0x1c8] sm:$0xff]  ;;  %v3908_v53 = vpack.c.bf16 %v306_v45, %v305_v44  ;;  %v3911_v55 = vpack.c.bf16 %v324_v49, %v323_v48 }
  0x24   : > { %v3956_v54 = vpack.c.bf16 %v338_v47, %v337_v46  ;;  %v3959_v56 = vpack.c.bf16 %v356_v52, %v355_v51  ;;  %v307_v57 = vld [vmem:[%s4748_s15 + $0x40] sm:$0xff]  ;;  %v308_v58 = vld [vmem:[%s4748_s15 + $0x48] sm:$0xff]  ;;  %v325_v61 = vld [vmem:[%s4748_s15 + $0xd0] sm:$0xff] }
  0x25   : > { %3898 = vmatpush3.bf16.xpose.msk.msra.mxu0 %vm4752_vm1, %v3896_v28  ;;  %v339_v59 = vld [vmem:[%s4748_s15 + $0x140] sm:$0xff]  ;;  %v340_v60 = vld [vmem:[%s4748_s15 + $0x148] sm:$0xff]  ;;  %v326_v62 = vld [vmem:[%s4748_s15 + $0xd8] sm:$0xff]  ;;  %v3914_v3 = vpack.c.bf16 %v308_v58, %v307_v57 }
  0x26   : > { %3946 = vmatpush3.bf16.xpose.msk.msra.mxu1 %vm4752_vm1, %v3944_v29  ;;  %3901 = vmatprep.subr.msk.bf16.mxu0 %vm4752_vm1, %v3899_v30  ;;  %v357_v63 = vld [vmem:[%s4748_s15 + $0x1d0] sm:$0xff]  ;;  %v358_v2 = vld [vmem:[%s4748_s15 + $0x1d8] sm:$0xff]  ;;  %v3962_v4 = vpack.c.bf16 %v340_v60, %v339_v59  ;;  %v3917_v5 = vpack.c.bf16 %v326_v62, %v325_v61  ;;  %v327_v11 = vld [vmem:[%s4748_s15 + $0xe0] sm:$0xff] }
  0x27   : > { %3949 = vmatprep.subr.msk.bf16.mxu1 %vm4752_vm1, %v3947_v31  ;;  %v3965_v6 = vpack.c.bf16 %v358_v2, %v357_v63  ;;  %v309_v7 = vld [vmem:[%s4748_s15 + $0x50] sm:$0xff]  ;;  %v310_v8 = vld [vmem:[%s4748_s15 + $0x58] sm:$0xff]  ;;  %v328_v12 = vld [vmem:[%s4748_s15 + $0xe8] sm:$0xff] }
  0x28   : > { %v341_v9 = vld [vmem:[%s4748_s15 + $0x150] sm:$0xff]  ;;  %v342_v10 = vld [vmem:[%s4748_s15 + $0x158] sm:$0xff]  ;;  %v359_v13 = vld [vmem:[%s4748_s15 + $0x1e0] sm:$0xff]  ;;  %v3920_v15 = vpack.c.bf16 %v310_v8, %v309_v7  ;;  %v3923_v17 = vpack.c.bf16 %v328_v12, %v327_v11 }
  0x29   : > { %v360_v14 = vld [vmem:[%s4748_s15 + $0x1e8] sm:$0xff]  ;;  %v3968_v16 = vpack.c.bf16 %v342_v10, %v341_v9  ;;  %v311_v19 = vld [vmem:[%s4748_s15 + $0x60] sm:$0xff]  ;;  %v329_v23 = vld [vmem:[%s4748_s15 + $0xf0] sm:$0xff] }
  0x2a   : > { %v3971_v18 = vpack.c.bf16 %v360_v14, %v359_v13  ;;  %v312_v20 = vld [vmem:[%s4748_s15 + $0x68] sm:$0xff]  ;;  %v343_v21 = vld [vmem:[%s4748_s15 + $0x160] sm:$0xff]  ;;  %v330_v24 = vld [vmem:[%s4748_s15 + $0xf8] sm:$0xff] }
  0x2b   : > { %v344_v22 = vld [vmem:[%s4748_s15 + $0x168] sm:$0xff]  ;;  %v361_v25 = vld [vmem:[%s4748_s15 + $0x1f0] sm:$0xff]  ;;  %v362_v26 = vld [vmem:[%s4748_s15 + $0x1f8] sm:$0xff]  ;;  %v3926_v27 = vpack.c.bf16 %v312_v20, %v311_v19  ;;  %v3929_v29 = vpack.c.bf16 %v330_v24, %v329_v23 }
  0x2c   : > { %v3974_v28 = vpack.c.bf16 %v344_v22, %v343_v21  ;;  %v3977_v30 = vpack.c.bf16 %v362_v26, %v361_v25  ;;  %v313_v31 = vld [vmem:[%s4748_s15 + $0x70] sm:$0xff]  ;;  %v314_v32 = vld [vmem:[%s4748_s15 + $0x78] sm:$0xff]  ;;  %v363_v33 = vld [vmem:[%s5606_s5] sm:$0xff] }
  0x2d   : > { %3904 = vmatpush3.bf16.xpose.msk.msra.mxu0 %vm4752_vm1, %v3902_v40  ;;  %v345_v34 = vld [vmem:[%s4748_s15 + $0x170] sm:$0xff]  ;;  %v346_v35 = vld [vmem:[%s4748_s15 + $0x178] sm:$0xff]  ;;  %386 = vperm.xlu0 %4360, %v363_v33   ;;  %v3932_v36 = vpack.c.bf16 %v314_v32, %v313_v31  ;;  %v279_v44 = vld [vmem:[%s5603_s2 + $0x8] sm:$0xff]  ;;  %s5557_s15 = scalar_lea.hbm %s5607_s6, %s3738_s11 }
  0x2e   : > { %3952 = vmatpush3.bf16.xpose.msk.msra.mxu1 %vm4752_vm1, %v3950_v41  ;;  %3907 = vmatprep.subr.msk.bf16.mxu0 %vm4752_vm1, %v3905_v42  ;;  %v3980_v37 = vpack.c.bf16 %v346_v35, %v345_v34  ;;  %v4364_v38 = vld [vmem:[%s4808_s19 + $0x4] ss:$16 sps:$4 sm:$0xff]   ;;  %v4367_v39 = vld [vmem:[%s4808_s19 + $0xc] ss:$16 sps:$4 sm:$0xff]   ;;  %v4362_v40 = vld [vmem:[%s4808_s19] ss:$16 sps:$4 sm:$0xff]  }
  0x2f   : > { %3955 = vmatprep.subr.msk.bf16.mxu1 %vm4752_vm1, %v3953_v43  ;;  %v4365_v41 = vld [vmem:[%s4808_s19 + $0x8] ss:$16 sps:$4 sm:$0xff]   ;;  %v4370_v42 = vld [vmem:[%s4808_s19 + $0x24] ss:$16 sps:$4 sm:$0xff]   ;;  %v4373_v43 = vld [vmem:[%s4808_s19 + $0x2c] ss:$16 sps:$4 sm:$0xff]  }
  0x30   : > { %v4368_v45 = vld [vmem:[%s4808_s19 + $0x20] ss:$16 sps:$4 sm:$0xff]   ;;  %v4376_v46 = vld [vmem:[%s4808_s19 + $0x44] ss:$16 sps:$4 sm:$0xff]   ;;  %v364_v47 = vld [vmem:[%s5606_s5 + $0x8] sm:$0xff] }
  0x31   : > { %v4379_v48 = vld [vmem:[%s4808_s19 + $0x4c] ss:$16 sps:$4 sm:$0xff]   ;;  %391 = vperm.xlu0 %4360, %v364_v47   ;;  %v365_v51 = vld [vmem:[%s5606_s5 + $0x10] sm:$0xff]  ;;  %v4383_v60 = vld [vmem:[%s4808_s19 + $0x68] ss:$16 sps:$4 sm:$0xff]  }
  0x32   : > { %v281_v49 = vld [vmem:[%s5603_s2 + $0x18] sm:$0xff]  ;;  %v4374_v52 = vld [vmem:[%s4808_s19 + $0x40] ss:$16 sps:$4 sm:$0xff]   ;;  %396 = vperm.xlu1 %4361, %v365_v51   ;;  %v4388_v61 = vld [vmem:[%s4808_s19 + $0x84] ss:$16 sps:$4 sm:$0xff]  }
  0x33   : > { %v284_v57 = vld [vmem:[%s5603_s2 + $0x30] sm:$0xff]  ;;  %v366_v59 = vld [vmem:[%s5606_s5 + $0x18] sm:$0xff]  ;;  %v286_v2 = vld [vmem:[%s5603_s2 + $0x40] sm:$0xff] }
  0x34   : > { %v4380_v58 = vld [vmem:[%s4808_s19 + $0x60] ss:$16 sps:$4 sm:$0xff]   ;;  %v4391_v62 = vld [vmem:[%s4808_s19 + $0x8c] ss:$16 sps:$4 sm:$0xff]   ;;  %v4395_v10 = vld [vmem:[%s4808_s19 + $0xa8] ss:$16 sps:$4 sm:$0xff]  }
  0x35   : > { %3910 = vmatpush3.bf16.xpose.msk.msra.mxu0 %vm4752_vm1, %v3908_v53  ;;  %v4377_v53 = vld [vmem:[%s4808_s19 + $0x48] ss:$16 sps:$4 sm:$0xff]   ;;  %v288_v8 = vld [vmem:[%s5603_s2 + $0x50] sm:$0xff]  ;;  %v4403_v12 = vld [vmem:[%s4808_s19 + $0xcc] ss:$16 sps:$4 sm:$0xff]  }
  0x36   : > { %3958 = vmatpush3.bf16.xpose.msk.msra.mxu1 %vm4752_vm1, %v3956_v54  ;;  %3913 = vmatprep.subr.msk.bf16.mxu0 %vm4752_vm1, %v3911_v55  ;;  %v4382_v54 = vld [vmem:[%s4808_s19 + $0x64] ss:$16 sps:$4 sm:$0xff]   ;;  %v4385_v55 = vld [vmem:[%s4808_s19 + $0x6c] ss:$16 sps:$4 sm:$0xff]   ;;  %v4392_v9 = vld [vmem:[%s4808_s19 + $0xa0] ss:$16 sps:$4 sm:$0xff]  }
  0x37   : > { %3961 = vmatprep.subr.msk.bf16.mxu1 %vm4752_vm1, %v3959_v56  ;;  %v283_v56 = vld [vmem:[%s5603_s2 + $0x28] sm:$0xff]  ;;  %v285_v63 = vld [vmem:[%s5603_s2 + $0x38] sm:$0xff]  ;;  %401 = vperm.xlu1 %4361, %v366_v59   ;;  %v4400_v11 = vld [vmem:[%s4808_s19 + $0xc4] ss:$16 sps:$4 sm:$0xff]  }
  0x38   : > { %v287_v7 = vld [vmem:[%s5603_s2 + $0x48] sm:$0xff]  ;;  %v289_v13 = vld [vmem:[%s5603_s2 + $0x58] sm:$0xff]  ;;  %v290_v14 = vld [vmem:[%s5603_s2 + $0x60] sm:$0xff] }
  0x39   : > { %v4409_v19 = vld [vmem:[%s4808_s19 + $0xec] ss:$16 sps:$4 sm:$0xff]   ;;  %v292_v21 = vld [vmem:[%s5603_s2 + $0x70] sm:$0xff]  ;;  %v4407_v24 = vld [vmem:[%s4808_s19 + $0xe8] ss:$16 sps:$4 sm:$0xff]  }
  0x3a   : > { %v291_v20 = vld [vmem:[%s5603_s2 + $0x68] sm:$0xff]  ;;  %v369_v22 = vld [vmem:[%s5606_s5 + $0x30] sm:$0xff] }
  0x3b   : > { %v4404_v23 = vld [vmem:[%s4808_s19 + $0xe0] ss:$16 sps:$4 sm:$0xff]   ;;  %v4412_v25 = vld [vmem:[%s4808_s19 + $0x104] ss:$16 sps:$4 sm:$0xff]   ;;  %v4415_v26 = vld [vmem:[%s4808_s19 + $0x10c] ss:$16 sps:$4 sm:$0xff]  }
  0x3c   : > { %v4413_v31 = vld [vmem:[%s4808_s19 + $0x108] ss:$16 sps:$4 sm:$0xff]   ;;  %v4418_v32 = vld [vmem:[%s4808_s19 + $0x124] ss:$16 sps:$4 sm:$0xff]   ;;  %v4421_v33 = vld [vmem:[%s4808_s19 + $0x12c] ss:$16 sps:$4 sm:$0xff]  }
  0x3d   : > { %3916 = vmatpush3.bf16.xpose.msk.msra.mxu0 %vm4752_vm1, %v3914_v3  ;;  %v4386_v3 = vld [vmem:[%s4808_s19 + $0x80] ss:$16 sps:$4 sm:$0xff]   ;;  %v295_v34 = vld [vmem:[%s5603_s2 + $0x88] sm:$0xff] }
  0x3e   : > { %3964 = vmatpush3.bf16.xpose.msk.msra.mxu1 %vm4752_vm1, %v3962_v4  ;;  %3919 = vmatprep.subr.msk.bf16.mxu0 %vm4752_vm1, %v3917_v5  ;;  %v4389_v4 = vld [vmem:[%s4808_s19 + $0x88] ss:$16 sps:$4 sm:$0xff]   ;;  %v4394_v5 = vld [vmem:[%s4808_s19 + $0xa4] ss:$16 sps:$4 sm:$0xff]   ;;  %v5114_v47 = vld [vmem:[%s5604_s3 + $0xc] ss:$16 sps:$4 sm:$0xff]  }
  0x3f   : > { %3967 = vmatprep.subr.msk.bf16.mxu1 %vm4752_vm1, %v3965_v6  ;;  %v4397_v6 = vld [vmem:[%s4808_s19 + $0xac] ss:$16 sps:$4 sm:$0xff]   ;;  %v296_v35 = vld [vmem:[%s5603_s2 + $0x90] sm:$0xff]  ;;  %v4431_v51 = vld [vmem:[%s4808_s19 + $0x168] ss:$16 sps:$4 sm:$0xff]  }
  0x40   : > { %v4445_v59 = vld [vmem:[%s4808_s19 + $0x1ac] ss:$16 sps:$4 sm:$0xff]  }
  0x45   : > { %3922 = vmatpush3.bf16.xpose.msk.msra.mxu0 %vm4752_vm1, %v3920_v15  ;;  %v367_v15 = vld [vmem:[%s5606_s5 + $0x20] sm:$0xff] }
  0x46   : > { %3970 = vmatpush3.bf16.xpose.msk.msra.mxu1 %vm4752_vm1, %v3968_v16  ;;  %3925 = vmatprep.subr.msk.bf16.mxu0 %vm4752_vm1, %v3923_v17  ;;  %v4398_v16 = vld [vmem:[%s4808_s19 + $0xc0] ss:$16 sps:$4 sm:$0xff]   ;;  %v4401_v17 = vld [vmem:[%s4808_s19 + $0xc8] ss:$16 sps:$4 sm:$0xff]  }
  0x47   : > { %3973 = vmatprep.subr.msk.bf16.mxu1 %vm4752_vm1, %v3971_v18  ;;  %v4406_v18 = vld [vmem:[%s4808_s19 + $0xe4] ss:$16 sps:$4 sm:$0xff]   ;;  %406 = vperm.xlu0 %4360, %v367_v15  }
  0x48   : > { %v4475_v15 = vld [vmem:[%s4808_s19 + $0x224] ss:$16 sps:$4 sm:$0xff]  }
  0x4b   : > { %416 = vperm.xlu0 %4360, %v369_v22   ;;  %v4484_v22 = vld [vmem:[%s4808_s19 + $0x244] ss:$16 sps:$4 sm:$0xff]  }
  0x4d   : > { %3928 = vmatpush3.bf16.xpose.msk.msra.mxu0 %vm4752_vm1, %v3926_v27  ;;  %v293_v27 = vld [vmem:[%s5603_s2 + $0x78] sm:$0xff] }
  0x4e   : > { %3976 = vmatpush3.bf16.xpose.msk.msra.mxu1 %vm4752_vm1, %v3974_v28  ;;  %3931 = vmatprep.subr.msk.bf16.mxu0 %vm4752_vm1, %v3929_v29  ;;  %v294_v28 = vld [vmem:[%s5603_s2 + $0x80] sm:$0xff] }
  0x4f   : > { %3979 = vmatprep.subr.msk.bf16.mxu1 %vm4752_vm1, %v3977_v30  ;;  %v371_v29 = vld [vmem:[%s5606_s5 + $0x40] sm:$0xff] }
  0x50   : > { %v4410_v30 = vld [vmem:[%s4808_s19 + $0x100] ss:$16 sps:$4 sm:$0xff]   ;;  %426 = vperm.xlu0 %4360, %v371_v29   ;;  %v4493_v29 = vld [vmem:[%s4808_s19 + $0x26c] ss:$16 sps:$4 sm:$0xff]  }
  0x55   : > { %3934 = vmatpush3.bf16.xpose.msk.msra.mxu0 %vm4752_vm1, %v3932_v36  ;;  %v373_v36 = vld [vmem:[%s5606_s5 + $0x50] sm:$0xff] }
  0x56   : > { %3982 = vmatpush3.bf16.xpose.msk.msra.mxu1 %vm4752_vm1, %v3980_v37  ;;  %2043 = vmatprep.subr.bf16.mxu0 %v4364_v38  ;;  %v4416_v37 = vld [vmem:[%s4808_s19 + $0x120] ss:$16 sps:$4 sm:$0xff]   ;;  %v4419_v38 = vld [vmem:[%s4808_s19 + $0x128] ss:$16 sps:$4 sm:$0xff]  }
  0x57   : > { %2096 = vmatprep.subr.bf16.mxu1 %v4367_v39  ;;  %v4424_v39 = vld [vmem:[%s4808_s19 + $0x144] ss:$16 sps:$4 sm:$0xff]   ;;  %436 = vperm.xlu0 %4360, %v373_v36   ;;  %v376_v36 = vld [vmem:[%s5606_s5 + $0x68] sm:$0xff] }
  0x5c   : > { %3772 = vmatmul.mubr.msk.f32.vlgmr.msra.gmra.mrb[0].mxu0 %vm489_vm0, %v4736_v0 }
  0x5d   : > { %3846 = vmatmul.mubr.msk.f32.vlgmr.msra.gmra.mrb[0].mxu1 %vm489_vm0, %v4736_v0  ;;  %2044 = vmatpush1.bf16.xpose.msra.mxu0 %v4362_v40  ;;  %v4371_v0 = vld [vmem:[%s4808_s19 + $0x28] ss:$16 sps:$4 sm:$0xff]   ;;  %v4427_v40 = vld [vmem:[%s4808_s19 + $0x14c] ss:$16 sps:$4 sm:$0xff]  }
  0x5e   : > { %2097 = vmatpush1.bf16.xpose.msra.mxu1 %v4365_v41  ;;  %2045 = vmatprep.subr.bf16.mxu0 %v4370_v42  ;;  %v297_v41 = vld [vmem:[%s5603_s2 + $0x98] sm:$0xff]  ;;  %v298_v42 = vld [vmem:[%s5603_s2 + $0xa0] sm:$0x7] }
  0x5f   : > { %2098 = vmatprep.subr.bf16.mxu1 %v4373_v43  ;;  %3773 = vmatprep.mubr.msk.f32.mxu0 %vm489_vm0, %v279_v44  ;;  %v375_v43 = vld [vmem:[%s5606_s5 + $0x60] sm:$0xff] }
  0x60   : > { %3847 = vmatprep.mubr.msk.f32.mxu1 %vm489_vm0, %v279_v44  ;;  %3774 = vmatmul.mubr.msk.f32.gmra.mrb[2].mxu0 %vm489_vm0, %v279_v44 }
  0x61   : > { %3848 = vmatmul.mubr.msk.f32.gmra.mrb[2].mxu1 %vm489_vm0, %v279_v44  ;;  %3775 = vmatprep.mubr.msk.f32.mxu0 %vm489_vm0, %v280_v1  ;;  %v4422_v44 = vld [vmem:[%s4808_s19 + $0x140] ss:$16 sps:$4 sm:$0xff]  }
  0x62   : > { %3849 = vmatprep.mubr.msk.f32.mxu1 %vm489_vm0, %v280_v1  ;;  %446 = vperm.xlu0 %4360, %v375_v43   ;;  %v4500_v43 = vld [vmem:[%s4808_s19 + $0x2a0] ss:$16 sps:$4 sm:$0xff]  }
  0x64   : > { %3776 = vmatmul.mubr.msk.f32.gmra.mrb[4].mxu0 %vm489_vm0, %v280_v1 }
  0x65   : > { %2046 = vmatpush1.bf16.xpose.msra.mxu0 %v4368_v45  ;;  %3850 = vmatmul.mubr.msk.f32.gmra.mrb[4].mxu1 %vm489_vm0, %v280_v1  ;;  %v4425_v1 = vld [vmem:[%s4808_s19 + $0x148] ss:$16 sps:$4 sm:$0xff]   ;;  %v4430_v45 = vld [vmem:[%s4808_s19 + $0x164] ss:$16 sps:$4 sm:$0xff]  }
  0x66   : > { %2099 = vmatpush1.bf16.xpose.msra.mxu1 %v4371_v0  ;;  %2047 = vmatprep.subr.bf16.mxu0 %v4376_v46  ;;  %v4433_v0 = vld [vmem:[%s4808_s19 + $0x16c] ss:$16 sps:$4 sm:$0xff]   ;;  %v5108_v46 = vld [vmem:[%s5604_s3 + $0x4] ss:$16 sps:$4 sm:$0xff]  }
  0x67   : > { %2100 = vmatprep.subr.bf16.mxu1 %v4379_v48  ;;  %3777 = vmatprep.mubr.msk.f32.mxu0 %vm489_vm0, %v281_v49  ;;  %v377_v48 = vld [vmem:[%s5606_s5 + $0x70] sm:$0xff] }
  0x68   : > { %3851 = vmatprep.mubr.msk.f32.mxu1 %vm489_vm0, %v281_v49  ;;  %3778 = vmatmul.mubr.msk.f32.gmra.mrb[6].mxu0 %vm489_vm0, %v281_v49 }
  0x69   : > { %3852 = vmatmul.mubr.msk.f32.gmra.mrb[6].mxu1 %vm489_vm0, %v281_v49  ;;  %3779 = vmatprep.mubr.msk.f32.mxu0 %vm489_vm0, %v282_v50  ;;  %v4428_v49 = vld [vmem:[%s4808_s19 + $0x160] ss:$16 sps:$4 sm:$0xff]  }
  0x6a   : > { %3853 = vmatprep.mubr.msk.f32.mxu1 %vm489_vm0, %v282_v50  ;;  %456 = vperm.xlu0 %4360, %v377_v48   ;;  %v4506_v48 = vld [vmem:[%s4808_s19 + $0x2c0] ss:$16 sps:$4 sm:$0xff]  }
  0x6c   : > { %3780 = vmatmul.mubr.msk.f32.gmra.mrb[8].mxu0 %vm489_vm0, %v282_v50 }
  0x6d   : > { %2048 = vmatpush1.bf16.xpose.msra.mxu0 %v4374_v52  ;;  %3854 = vmatmul.mubr.msk.f32.gmra.mrb[8].mxu1 %vm489_vm0, %v282_v50  ;;  %v379_v50 = vld [vmem:[%s5606_s5 + $0x80] sm:$0xff] }
  0x6e   : > { %2101 = vmatpush1.bf16.xpose.msra.mxu1 %v4377_v53  ;;  %2049 = vmatprep.subr.bf16.mxu0 %v4382_v54  ;;  %v4436_v52 = vld [vmem:[%s4808_s19 + $0x184] ss:$16 sps:$4 sm:$0xff]   ;;  %v4439_v53 = vld [vmem:[%s4808_s19 + $0x18c] ss:$16 sps:$4 sm:$0xff]  }
  0x6f   : > { %2102 = vmatprep.subr.bf16.mxu1 %v4385_v55  ;;  %3781 = vmatprep.mubr.msk.f32.mxu0 %vm489_vm0, %v283_v56  ;;  %v381_v54 = vld [vmem:[%s5606_s5 + $0x90] sm:$0xff] }
  0x70   : > { %3855 = vmatprep.mubr.msk.f32.mxu1 %vm489_vm0, %v283_v56  ;;  %3782 = vmatmul.mubr.msk.f32.gmra.mrb[10].mxu0 %vm489_vm0, %v283_v56  ;;  %v4434_v55 = vld [vmem:[%s4808_s19 + $0x180] ss:$16 sps:$4 sm:$0xff]  }
  0x71   : > { %3856 = vmatmul.mubr.msk.f32.gmra.mrb[10].mxu1 %vm489_vm0, %v283_v56  ;;  %3783 = vmatprep.mubr.msk.f32.mxu0 %vm489_vm0, %v284_v57  ;;  %v383_v56 = vld [vmem:[%s5606_s5 + $0xa0] sm:$0x7] }
  0x72   : > { %3857 = vmatprep.mubr.msk.f32.mxu1 %vm489_vm0, %v284_v57  ;;  %466 = vperm.xlu0 %4360, %v379_v50   ;;  %v4509_v50 = vld [vmem:[%s4808_s19 + $0x2c8] ss:$16 sps:$4 sm:$0xff]  }
  0x74   : > { %3784 = vmatmul.mubr.msk.f32.gmra.mrb[12].mxu0 %vm489_vm0, %v284_v57 }
  0x75   : > { %2050 = vmatpush1.bf16.xpose.msra.mxu0 %v4380_v58  ;;  %3858 = vmatmul.mubr.msk.f32.gmra.mrb[12].mxu1 %vm489_vm0, %v284_v57  ;;  %v4437_v57 = vld [vmem:[%s4808_s19 + $0x188] ss:$16 sps:$4 sm:$0xff]   ;;  %v4442_v58 = vld [vmem:[%s4808_s19 + $0x1a4] ss:$16 sps:$4 sm:$0xff]  }
  0x76   : > { %2103 = vmatpush1.bf16.xpose.msra.mxu1 %v4383_v60  ;;  %2051 = vmatprep.subr.bf16.mxu0 %v4388_v61  ;;  %v4440_v60 = vld [vmem:[%s4808_s19 + $0x1a0] ss:$16 sps:$4 sm:$0xff]   ;;  %v4443_v61 = vld [vmem:[%s4808_s19 + $0x1a8] ss:$16 sps:$4 sm:$0xff]  }
  0x77   : > { %2104 = vmatprep.subr.bf16.mxu1 %v4391_v62  ;;  %3785 = vmatprep.mubr.msk.f32.mxu0 %vm489_vm0, %v285_v63  ;;  %v4448_v62 = vld [vmem:[%s4808_s19 + $0x1c4] ss:$16 sps:$4 sm:$0xff]  }
  0x78   : > { %3859 = vmatprep.mubr.msk.f32.mxu1 %vm489_vm0, %v285_v63  ;;  %3786 = vmatmul.mubr.msk.f32.gmra.mrb[14].mxu0 %vm489_vm0, %v285_v63 }
  0x79   : > { %3860 = vmatmul.mubr.msk.f32.gmra.mrb[14].mxu1 %vm489_vm0, %v285_v63  ;;  %3787 = vmatprep.mubr.msk.f32.mxu0 %vm489_vm0, %v286_v2  ;;  %v4451_v63 = vld [vmem:[%s4808_s19 + $0x1cc] ss:$16 sps:$4 sm:$0xff]  }
  0x7a   : > { %3861 = vmatprep.mubr.msk.f32.mxu1 %vm489_vm0, %v286_v2  ;;  %476 = vperm.xlu0 %4360, %v381_v54  }
  0x7c   : > { %3788 = vmatmul.mubr.msk.f32.gmra.mrb[16].mxu0 %vm489_vm0, %v286_v2 }
  0x7d   : > { %2052 = vmatpush1.bf16.xpose.msra.mxu0 %v4386_v3  ;;  %3862 = vmatmul.mubr.msk.f32.gmra.mrb[16].mxu1 %vm489_vm0, %v286_v2  ;;  %v4446_v2 = vld [vmem:[%s4808_s19 + $0x1c0] ss:$16 sps:$4 sm:$0xff]   ;;  %v4449_v3 = vld [vmem:[%s4808_s19 + $0x1c8] ss:$16 sps:$4 sm:$0xff]  }
  0x7e   : > { %2105 = vmatpush1.bf16.xpose.msra.mxu1 %v4389_v4  ;;  %2053 = vmatprep.subr.bf16.mxu0 %v4394_v5  ;;  %v4454_v4 = vld [vmem:[%s4808_s19 + $0x1e4] ss:$16 sps:$4 sm:$0xff]   ;;  %v4457_v5 = vld [vmem:[%s4808_s19 + $0x1ec] ss:$16 sps:$4 sm:$0xff]  }
  0x7f   : > { %2106 = vmatprep.subr.bf16.mxu1 %v4397_v6  ;;  %3789 = vmatprep.mubr.msk.f32.mxu0 %vm489_vm0, %v287_v7  ;;  %v4452_v6 = vld [vmem:[%s4808_s19 + $0x1e0] ss:$16 sps:$4 sm:$0xff]  }
  0x80   : > { %3863 = vmatprep.mubr.msk.f32.mxu1 %vm489_vm0, %v287_v7  ;;  %3790 = vmatmul.mubr.msk.f32.gmra.mrb[18].mxu0 %vm489_vm0, %v287_v7 }
  0x81   : > { %3864 = vmatmul.mubr.msk.f32.gmra.mrb[18].mxu1 %vm489_vm0, %v287_v7  ;;  %3791 = vmatprep.mubr.msk.f32.mxu0 %vm489_vm0, %v288_v8  ;;  %v4455_v7 = vld [vmem:[%s4808_s19 + $0x1e8] ss:$16 sps:$4 sm:$0xff]  }
  0x82   : > { %3865 = vmatprep.mubr.msk.f32.mxu1 %vm489_vm0, %v288_v8  ;;  %486 = vperm.xlu0 %4360, %v383_v56   ;;  %v4520_v56 = vld [vmem:[%s4808_s19 + $0x304] ss:$16 sps:$4 sm:$0xff]  }
  0x84   : > { %3792 = vmatmul.mubr.msk.f32.gmra.mrb[20].mxu0 %vm489_vm0, %v288_v8 }
  0x85   : > { %2054 = vmatpush1.bf16.xpose.msra.mxu0 %v4392_v9  ;;  %3866 = vmatmul.mubr.msk.f32.gmra.mrb[20].mxu1 %vm489_vm0, %v288_v8  ;;  %v4466_v8 = vld [vmem:[%s4808_s19 + $0x204] ss:$16 sps:$4 sm:$0xff]   ;;  %v4469_v9 = vld [vmem:[%s4808_s19 + $0x20c] ss:$16 sps:$4 sm:$0xff]  }
  0x86   : > { %2107 = vmatpush1.bf16.xpose.msra.mxu1 %v4395_v10  ;;  %2055 = vmatprep.subr.bf16.mxu0 %v4400_v11  ;;  %v5154_v10 = vld [vmem:[%s5604_s3] ss:$16 sps:$4 sm:$0xff]   ;;  %v5159_v11 = vld [vmem:[%s5604_s3 + $0x8] ss:$16 sps:$4 sm:$0xff]  }
  0x87   : > { %2108 = vmatprep.subr.bf16.mxu1 %v4403_v12  ;;  %3793 = vmatprep.mubr.msk.f32.mxu0 %vm489_vm0, %v289_v13  ;;  %v4464_v12 = vld [vmem:[%s4808_s19 + $0x200] ss:$16 sps:$4 sm:$0xff]  }
  0x88   : > { %3867 = vmatprep.mubr.msk.f32.mxu1 %vm489_vm0, %v289_v13  ;;  %3794 = vmatmul.mubr.msk.f32.gmra.mrb[22].mxu0 %vm489_vm0, %v289_v13 }
  0x89   : > { %3868 = vmatmul.mubr.msk.f32.gmra.mrb[22].mxu1 %vm489_vm0, %v289_v13  ;;  %3795 = vmatprep.mubr.msk.f32.mxu0 %vm489_vm0, %v290_v14  ;;  %v4467_v13 = vld [vmem:[%s4808_s19 + $0x208] ss:$16 sps:$4 sm:$0xff]  }
  0x8a   : > { %3869 = vmatprep.mubr.msk.f32.mxu1 %vm489_vm0, %v290_v14 }
  0x8c   : > { %3796 = vmatmul.mubr.msk.f32.gmra.mrb[24].mxu0 %vm489_vm0, %v290_v14 }
  0x8d   : > { %2056 = vmatpush1.bf16.xpose.msra.mxu0 %v4398_v16  ;;  %3870 = vmatmul.mubr.msk.f32.gmra.mrb[24].mxu1 %vm489_vm0, %v290_v14  ;;  %v5166_v14 = vld [vmem:[%s5604_s3 + $0x24] ss:$16 sps:$4 sm:$0xff]   ;;  %v4478_v16 = vld [vmem:[%s4808_s19 + $0x22c] ss:$16 sps:$4 sm:$0xff]  }
  0x8e   : > { %2109 = vmatpush1.bf16.xpose.msra.mxu1 %v4401_v17  ;;  %2057 = vmatprep.subr.bf16.mxu0 %v4406_v18  ;;  %v5174_v17 = vld [vmem:[%s5604_s3 + $0x2c] ss:$16 sps:$4 sm:$0xff]   ;;  %v5181_v18 = vld [vmem:[%s5604_s3 + $0x20] ss:$16 sps:$4 sm:$0xff]  }
  0x8f   : > { %2110 = vmatprep.subr.bf16.mxu1 %v4409_v19  ;;  %3797 = vmatprep.mubr.msk.f32.mxu0 %vm489_vm0, %v291_v20  ;;  %v4473_v19 = vld [vmem:[%s4808_s19 + $0x220] ss:$16 sps:$4 sm:$0xff]  }
  0x90   : > { %3871 = vmatprep.mubr.msk.f32.mxu1 %vm489_vm0, %v291_v20  ;;  %3798 = vmatmul.mubr.msk.f32.gmra.mrb[26].mxu0 %vm489_vm0, %v291_v20 }
  0x91   : > { %3872 = vmatmul.mubr.msk.f32.gmra.mrb[26].mxu1 %vm489_vm0, %v291_v20  ;;  %3799 = vmatprep.mubr.msk.f32.mxu0 %vm489_vm0, %v292_v21  ;;  %v5188_v20 = vld [vmem:[%s5604_s3 + $0x28] ss:$16 sps:$4 sm:$0xff]  }
  0x92   : > { %3873 = vmatprep.mubr.msk.f32.mxu1 %vm489_vm0, %v292_v21 }
  0x94   : > { %3800 = vmatmul.mubr.msk.f32.gmra.mrb[28].mxu0 %vm489_vm0, %v292_v21 }
  0x95   : > { %2058 = vmatpush1.bf16.xpose.msra.mxu0 %v4404_v23  ;;  %3874 = vmatmul.mubr.msk.f32.gmra.mrb[28].mxu1 %vm489_vm0, %v292_v21  ;;  %v4476_v21 = vld [vmem:[%s4808_s19 + $0x228] ss:$16 sps:$4 sm:$0xff]   ;;  %v4487_v23 = vld [vmem:[%s4808_s19 + $0x24c] ss:$16 sps:$4 sm:$0xff]  }
  0x96   : > { %2111 = vmatpush1.bf16.xpose.msra.mxu1 %v4407_v24  ;;  %2059 = vmatprep.subr.bf16.mxu0 %v4412_v25  ;;  %v368_v24 = vld [vmem:[%s5606_s5 + $0x28] sm:$0xff]  ;;  %v4482_v25 = vld [vmem:[%s4808_s19 + $0x240] ss:$16 sps:$4 sm:$0xff]  }
  0x97   : > { %2112 = vmatprep.subr.bf16.mxu1 %v4415_v26  ;;  %3801 = vmatprep.mubr.msk.f32.mxu0 %vm489_vm0, %v293_v27  ;;  %v370_v26 = vld [vmem:[%s5606_s5 + $0x38] sm:$0xff] }
  0x98   : > { %3875 = vmatprep.mubr.msk.f32.mxu1 %vm489_vm0, %v293_v27  ;;  %3802 = vmatmul.mubr.msk.f32.gmra.mrb[30].mxu0 %vm489_vm0, %v293_v27 }
  0x99   : > { %3876 = vmatmul.mubr.msk.f32.gmra.mrb[30].mxu1 %vm489_vm0, %v293_v27  ;;  %3803 = vmatprep.mubr.msk.f32.mxu0 %vm489_vm0, %v294_v28  ;;  %v4485_v27 = vld [vmem:[%s4808_s19 + $0x248] ss:$16 sps:$4 sm:$0xff]  }
  0x9a   : > { %3877 = vmatprep.mubr.msk.f32.mxu1 %vm489_vm0, %v294_v28  ;;  %411 = vperm.xlu1 %4361, %v368_v24  }
  0x9c   : > { %3804 = vmatmul.mubr.msk.f32.gmra.mrb[32].mxu0 %vm489_vm0, %v294_v28 }
  0x9d   : > { %2060 = vmatpush1.bf16.xpose.msra.mxu0 %v4410_v30  ;;  %3878 = vmatmul.mubr.msk.f32.gmra.mrb[32].mxu1 %vm489_vm0, %v294_v28  ;;  %v4490_v28 = vld [vmem:[%s4808_s19 + $0x264] ss:$16 sps:$4 sm:$0xff]   ;;  %v372_v30 = vld [vmem:[%s5606_s5 + $0x48] sm:$0xff] }
  0x9e   : > { %2113 = vmatpush1.bf16.xpose.msra.mxu1 %v4413_v31  ;;  %2061 = vmatprep.subr.bf16.mxu0 %v4418_v32  ;;  %v4488_v31 = vld [vmem:[%s4808_s19 + $0x260] ss:$16 sps:$4 sm:$0xff]   ;;  %v374_v32 = vld [vmem:[%s5606_s5 + $0x58] sm:$0xff] }
  0x9f   : > { %2114 = vmatprep.subr.bf16.mxu1 %v4421_v33  ;;  %3805 = vmatprep.mubr.msk.f32.mxu0 %vm489_vm0, %v295_v34  ;;  %v4491_v33 = vld [vmem:[%s4808_s19 + $0x268] ss:$16 sps:$4 sm:$0xff]  }
  0xa0   : > { %3879 = vmatprep.mubr.msk.f32.mxu1 %vm489_vm0, %v295_v34  ;;  %3806 = vmatmul.mubr.msk.f32.gmra.mrb[34].mxu0 %vm489_vm0, %v295_v34 }
  0xa1   : > { %3880 = vmatmul.mubr.msk.f32.gmra.mrb[34].mxu1 %vm489_vm0, %v295_v34  ;;  %3807 = vmatprep.mubr.msk.f32.mxu0 %vm489_vm0, %v296_v35  ;;  %v4496_v34 = vld [vmem:[%s4808_s19 + $0x284] ss:$16 sps:$4 sm:$0xff]  }
  0xa2   : > { %3881 = vmatprep.mubr.msk.f32.mxu1 %vm489_vm0, %v296_v35  ;;  %421 = vperm.xlu1 %4361, %v370_v26  }
  0xa4   : > { %3808 = vmatmul.mubr.msk.f32.gmra.mrb[36].mxu0 %vm489_vm0, %v296_v35 }
  0xa5   : > { %2062 = vmatpush1.bf16.xpose.msra.mxu0 %v4416_v37  ;;  %3882 = vmatmul.mubr.msk.f32.gmra.mrb[36].mxu1 %vm489_vm0, %v296_v35  ;;  %v4499_v35 = vld [vmem:[%s4808_s19 + $0x28c] ss:$16 sps:$4 sm:$0xff]   ;;  %v4494_v37 = vld [vmem:[%s4808_s19 + $0x280] ss:$16 sps:$4 sm:$0xff]  }
  0xa6   : > { %2115 = vmatpush1.bf16.xpose.msra.mxu1 %v4419_v38  ;;  %2063 = vmatprep.subr.bf16.mxu0 %v4424_v39  ;;  %v378_v38 = vld [vmem:[%s5606_s5 + $0x78] sm:$0xff] }
  0xa7   : > { %2116 = vmatprep.subr.bf16.mxu1 %v4427_v40  ;;  %3809 = vmatprep.mubr.msk.f32.mxu0 %vm489_vm0, %v297_v41  ;;  %v4497_v39 = vld [vmem:[%s4808_s19 + $0x288] ss:$16 sps:$4 sm:$0xff]   ;;  %v4502_v40 = vld [vmem:[%s4808_s19 + $0x2a4] ss:$16 sps:$4 sm:$0xff]  }
  0xa8   : > { %3883 = vmatprep.mubr.msk.f32.mxu1 %vm489_vm0, %v297_v41  ;;  %3810 = vmatmul.mubr.msk.f32.gmra.mrb[38].mxu0 %vm489_vm0, %v297_v41 }
  0xa9   : > { %3884 = vmatmul.mubr.msk.f32.gmra.mrb[38].mxu1 %vm489_vm0, %v297_v41  ;;  %3811 = vmatprep.mubr.msk.f32.mxu0 %vm489_vm0, %v298_v42  ;;  %v4505_v41 = vld [vmem:[%s4808_s19 + $0x2ac] ss:$16 sps:$4 sm:$0xff]  }
  0xaa   : > { %3885 = vmatprep.mubr.msk.f32.mxu1 %vm489_vm0, %v298_v42  ;;  %431 = vperm.xlu1 %4361, %v372_v30   ;;  %v4547_v30 = vld [vmem:[%s4808_s19 + $0x38c] ss:$16 sps:$4 sm:$0xff]  }
  0xac   : > { %3812 = vmatmul.mubr.msk.f32.gmra.mrb[40].mxu0 %vm489_vm0, %v298_v42 }
  0xad   : > { %2064 = vmatpush1.bf16.xpose.msra.mxu0 %v4422_v44  ;;  %3886 = vmatmul.mubr.msk.f32.gmra.mrb[40].mxu1 %vm489_vm0, %v298_v42  ;;  %v380_v42 = vld [vmem:[%s5606_s5 + $0x88] sm:$0xff]  ;;  %v5231_v44 = vpop.permute.xlu0 %386 }
  0xae   : > { %2117 = vmatpush1.bf16.xpose.msra.mxu1 %v4425_v1  ;;  %2065 = vmatprep.subr.bf16.mxu0 %v4430_v45  ;;  %v4503_v1 = vld [vmem:[%s4808_s19 + $0x2a8] ss:$16 sps:$4 sm:$0xff]   ;;  %v4508_v45 = vld [vmem:[%s4808_s19 + $0x2c4] ss:$16 sps:$4 sm:$0xff]  }
  0xaf   : > { %2118 = vmatprep.subr.bf16.mxu1 %v4433_v0  ;;  %2075 = vmatprep.mubr.bf16.mxu0 %v5108_v46  ;;  %v4511_v0 = vld [vmem:[%s4808_s19 + $0x2cc] ss:$16 sps:$4 sm:$0xff]  }
  0xb0   : > { %2128 = vmatprep.mubr.bf16.mxu1 %v5114_v47  ;;  %441 = vperm.xlu1 %4361, %v374_v32  }
  0xb4   : > { %451 = vperm.xlu1 %4361, %v376_v36  }
  0xb5   : > { %2066 = vmatpush1.bf16.xpose.msra.mxu0 %v4428_v49 }
  0xb6   : > { %2119 = vmatpush1.bf16.xpose.msra.mxu1 %v4431_v51  ;;  %2067 = vmatprep.subr.bf16.mxu0 %v4436_v52  ;;  %v4514_v51 = vld [vmem:[%s4808_s19 + $0x2e4] ss:$16 sps:$4 sm:$0xff]   ;;  %v4517_v52 = vld [vmem:[%s4808_s19 + $0x2ec] ss:$16 sps:$4 sm:$0xff]  }
  0xb7   : > { %2120 = vmatprep.subr.bf16.mxu1 %v4439_v53  ;;  %v4512_v53 = vld [vmem:[%s4808_s19 + $0x2e0] ss:$16 sps:$4 sm:$0xff]  }
  0xb8   : > { %461 = vperm.xlu1 %4361, %v378_v38  }
  0xbc   : > { %471 = vperm.xlu1 %4361, %v380_v42  }
  0xbd   : > { %2068 = vmatpush1.bf16.xpose.msra.mxu0 %v4434_v55  ;;  %v4515_v55 = vld [vmem:[%s4808_s19 + $0x2e8] ss:$16 sps:$4 sm:$0xff]  }
  0xbe   : > { %2121 = vmatpush1.bf16.xpose.msra.mxu1 %v4437_v57  ;;  %2069 = vmatprep.subr.bf16.mxu0 %v4442_v58  ;;  %v4523_v57 = vld [vmem:[%s4808_s19 + $0x30c] ss:$16 sps:$4 sm:$0xff]   ;;  %v4518_v58 = vld [vmem:[%s4808_s19 + $0x300] ss:$16 sps:$4 sm:$0xff]  }
  0xbf   : > { %2122 = vmatprep.subr.bf16.mxu1 %v4445_v59 }
  0xc5   : > { %2070 = vmatpush1.bf16.xpose.msra.mxu0 %v4440_v60  ;;  %v4521_v60 = vld [vmem:[%s4808_s19 + $0x308] ss:$16 sps:$4 sm:$0xff]  }
  0xc6   : > { %2123 = vmatpush1.bf16.xpose.msra.mxu1 %v4443_v61  ;;  %2071 = vmatprep.subr.bf16.mxu0 %v4448_v62  ;;  %v4526_v61 = vld [vmem:[%s4808_s19 + $0x324] ss:$16 sps:$4 sm:$0xff]   ;;  %v4529_v62 = vld [vmem:[%s4808_s19 + $0x32c] ss:$16 sps:$4 sm:$0xff]  }
  0xc7   : > { %2124 = vmatprep.subr.bf16.mxu1 %v4451_v63  ;;  %v4524_v63 = vld [vmem:[%s4808_s19 + $0x320] ss:$16 sps:$4 sm:$0xff]  }
  0xcd   : > { %2072 = vmatpush1.bf16.xpose.msra.mxu0 %v4446_v2 }
  0xce   : > { %2125 = vmatpush1.bf16.xpose.msra.mxu1 %v4449_v3  ;;  %2073 = vmatprep.subr.bf16.mxu0 %v4454_v4  ;;  %v4527_v3 = vld [vmem:[%s4808_s19 + $0x328] ss:$16 sps:$4 sm:$0xff]   ;;  %v4532_v4 = vld [vmem:[%s4808_s19 + $0x344] ss:$16 sps:$4 sm:$0xff]  }
  0xcf   : > { %2126 = vmatprep.subr.bf16.mxu1 %v4457_v5  ;;  %v4535_v5 = vld [vmem:[%s4808_s19 + $0x34c] ss:$16 sps:$4 sm:$0xff]  }
  0xd5   : > { %2074 = vmatpush1.bf16.xpose.msra.mxu0 %v4452_v6  ;;  %v4530_v6 = vld [vmem:[%s4808_s19 + $0x340] ss:$16 sps:$4 sm:$0xff]  }
  0xd6   : > { %2127 = vmatpush1.bf16.xpose.msra.mxu1 %v4455_v7  ;;  %2149 = vmatprep.subr.bf16.mxu0 %v4466_v8  ;;  %v4533_v8 = vld [vmem:[%s4808_s19 + $0x348] ss:$16 sps:$4 sm:$0xff]  }
  0xd7   : > { %2202 = vmatprep.subr.bf16.mxu1 %v4469_v9  ;;  %v4538_v9 = vld [vmem:[%s4808_s19 + $0x364] ss:$16 sps:$4 sm:$0xff]  }
  0xdc   : > { %2076 = vmatmul.mubr.bf16.vlgmr.msra.gmra.mrb[44].mxu0 %v5154_v10 }
  0xdd   : > { %2129 = vmatmul.mubr.bf16.vlgmr.msra.gmra.mrb[44].mxu1 %v5159_v11  ;;  %2150 = vmatpush1.bf16.xpose.msra.mxu0 %v4464_v12  ;;  %v4541_v12 = vld [vmem:[%s4808_s19 + $0x36c] ss:$16 sps:$4 sm:$0xff]  }
  0xde   : > { %2203 = vmatpush1.bf16.xpose.msra.mxu1 %v4467_v13  ;;  %2085 = vmatprep.mubr.bf16.mxu0 %v5166_v14 }
  0xdf   : > { %2151 = vmatprep.subr.bf16.mxu0 %v4475_v15  ;;  %2204 = vmatprep.subr.bf16.mxu1 %v4478_v16 }
  0xe0   : > { %2138 = vmatprep.mubr.bf16.mxu1 %v5174_v17 }
  0xe4   : > { %2086 = vmatmul.mubr.bf16.gmra.mrb[48].mxu0 %v5181_v18 }
  0xe5   : > { %2152 = vmatpush1.bf16.xpose.msra.mxu0 %v4473_v19  ;;  %2139 = vmatmul.mubr.bf16.gmra.mrb[48].mxu1 %v5188_v20 }
  0xe6   : > { %2205 = vmatpush1.bf16.xpose.msra.mxu1 %v4476_v21  ;;  %2153 = vmatprep.subr.bf16.mxu0 %v4484_v22 }
  0xe7   : > { %2206 = vmatprep.subr.bf16.mxu1 %v4487_v23  ;;  %2181 = vmatprep.mubr.bf16.mxu0 %v5108_v46  ;;  %v382_v46 = vld [vmem:[%s5606_s5 + $0x98] sm:$0xff] }
  0xe8   : > { %2234 = vmatprep.mubr.bf16.mxu1 %v5114_v47  ;;  %481 = vperm.xlu1 %4361, %v382_v46   ;;  %v5239_v47 = vpop.permute.xlu0 %391 }
  0xec   : > { %v5242_v49 = vpop.permute.xlu0 %406 }
  0xed   : > { %2154 = vmatpush1.bf16.xpose.msra.mxu0 %v4482_v25  ;;  %v4536_v25 = vld [vmem:[%s4808_s19 + $0x360] ss:$16 sps:$4 sm:$0xff]  }
  0xee   : > { %2207 = vmatpush1.bf16.xpose.msra.mxu1 %v4485_v27  ;;  %2155 = vmatprep.subr.bf16.mxu0 %v4490_v28  ;;  %v4539_v27 = vld [vmem:[%s4808_s19 + $0x368] ss:$16 sps:$4 sm:$0xff]   ;;  %v4544_v28 = vld [vmem:[%s4808_s19 + $0x384] ss:$16 sps:$4 sm:$0xff]  }
  0xef   : > { %2208 = vmatprep.subr.bf16.mxu1 %v4493_v29  ;;  %v397_v29 = vpop.permute.xlu1 %396 }
  0xf0   : > { %v5248_v54 = vpop.permute.xlu0 %416 }
  0xf4   : > { %v5254_v59 = vpop.permute.xlu0 %426 }
  0xf5   : > { %2156 = vmatpush1.bf16.xpose.msra.mxu0 %v4488_v31 }
  0xf6   : > { %2209 = vmatpush1.bf16.xpose.msra.mxu1 %v4491_v33  ;;  %2157 = vmatprep.subr.bf16.mxu0 %v4496_v34 }
  0xf7   : > { %2210 = vmatprep.subr.bf16.mxu1 %v4499_v35 }
  0xf8   : > { %v5260_v2 = vpop.permute.xlu0 %436 }
  0xfc   : > { %v5266_v7 = vpop.permute.xlu0 %446 }
  0xfd   : > { %2158 = vmatpush1.bf16.xpose.msra.mxu0 %v4494_v37 }
  0xfe   : > { %2211 = vmatpush1.bf16.xpose.msra.mxu1 %v4497_v39  ;;  %2159 = vmatprep.subr.bf16.mxu0 %v4502_v40 }
  0xff   : > { %2212 = vmatprep.subr.bf16.mxu1 %v4505_v41 }
 0x100   : > { %v5271_v15 = vpop.permute.xlu0 %456 }
 0x104   : > { %v5289_v32 = vpop.permute.xlu0 %466 }
 0x105   : > { %2160 = vmatpush1.bf16.xpose.msra.mxu0 %v4500_v43  ;;  %4231 = vst [vmem:[#allocation2 + $0x210] sm:$0xff] %v5289_v32  ;;  %4234 = vst [vmem:[#allocation2 + $0x218] sm:$0xff] %v5289_v32 }
 0x106   : > { %2213 = vmatpush1.bf16.xpose.msra.mxu1 %v4503_v1  ;;  %2161 = vmatprep.subr.bf16.mxu0 %v4508_v45  ;;  %v4542_v1 = vld [vmem:[%s4808_s19 + $0x380] ss:$16 sps:$4 sm:$0xff]  }
 0x107   : > { %2214 = vmatprep.subr.bf16.mxu1 %v4511_v0 }
 0x108   : > { %v477_v41 = vpop.permute.xlu0 %476 }
 0x109   : > { %4147 = vst [vmem:[#allocation2 + $0x240] sm:$0xff] %v477_v41  ;;  %4150 = vst [vmem:[#allocation2 + $0x248] sm:$0xff] %v477_v41 }
 0x10a   : > { %4243 = vst [vmem:[#allocation2 + $0x250] sm:$0xff] %v477_v41  ;;  %4246 = vst [vmem:[#allocation2 + $0x258] sm:$0xff] %v477_v41 }
 0x10d   : > { %2162 = vmatpush1.bf16.xpose.msra.mxu0 %v4506_v48  ;;  %v4545_v48 = vld [vmem:[%s4808_s19 + $0x388] ss:$16 sps:$4 sm:$0xff]  }
 0x10e   : > { %2215 = vmatpush1.bf16.xpose.msra.mxu1 %v4509_v50  ;;  %2163 = vmatprep.subr.bf16.mxu0 %v4514_v51  ;;  %v4550_v50 = vld [vmem:[%s4808_s19 + $0x3a4] ss:$16 sps:$4 sm:$0xff]  }
 0x10f   : > { %2216 = vmatprep.subr.bf16.mxu1 %v4517_v52  ;;  %v4553_v52 = vld [vmem:[%s4808_s19 + $0x3ac] ss:$16 sps:$4 sm:$0xff]  }
 0x115   : > { %2164 = vmatpush1.bf16.xpose.msra.mxu0 %v4512_v53 }
 0x116   : > { %2217 = vmatpush1.bf16.xpose.msra.mxu1 %v4515_v55  ;;  %2165 = vmatprep.subr.bf16.mxu0 %v4520_v56 }
 0x117   : > { %2218 = vmatprep.subr.bf16.mxu1 %v4523_v57 }
 0x11d   : > { %2166 = vmatpush1.bf16.xpose.msra.mxu0 %v4518_v58 }
 0x11e   : > { %2219 = vmatpush1.bf16.xpose.msra.mxu1 %v4521_v60  ;;  %2167 = vmatprep.subr.bf16.mxu0 %v4526_v61 }
 0x11f   : > { %2220 = vmatprep.subr.bf16.mxu1 %v4529_v62 }
 0x125   : > { %2168 = vmatpush1.bf16.xpose.msra.mxu0 %v4524_v63  ;;  %v4548_v63 = vld [vmem:[%s4808_s19 + $0x3a0] ss:$16 sps:$4 sm:$0xff]  }
 0x126   : > { %2221 = vmatpush1.bf16.xpose.msra.mxu1 %v4527_v3  ;;  %2169 = vmatprep.subr.bf16.mxu0 %v4532_v4  ;;  %v4551_v3 = vld [vmem:[%s4808_s19 + $0x3a8] ss:$16 sps:$4 sm:$0xff]   ;;  %v4556_v4 = vld [vmem:[%s4808_s19 + $0x3c4] ss:$16 sps:$4 sm:$0xff]  }
 0x127   : > { %2222 = vmatprep.subr.bf16.mxu1 %v4535_v5  ;;  %v4559_v5 = vld [vmem:[%s4808_s19 + $0x3cc] ss:$16 sps:$4 sm:$0xff]  }
 0x12d   : > { %2170 = vmatpush1.bf16.xpose.msra.mxu0 %v4530_v6  ;;  %v4554_v6 = vld [vmem:[%s4808_s19 + $0x3c0] ss:$16 sps:$4 sm:$0xff]  }
 0x12e   : > { %2223 = vmatpush1.bf16.xpose.msra.mxu1 %v4533_v8  ;;  %2171 = vmatprep.subr.bf16.mxu0 %v4538_v9  ;;  %v4557_v8 = vld [vmem:[%s4808_s19 + $0x3c8] ss:$16 sps:$4 sm:$0xff]   ;;  %v4562_v9 = vld [vmem:[%s4808_s19 + $0x3e4] ss:$16 sps:$4 sm:$0xff]  }
 0x12f   : > { %v811_v13 = vpop.f32.mrb[0].mxu0  ;;  %2224 = vmatprep.subr.bf16.mxu1 %v4541_v12  ;;  %v4565_v12 = vld [vmem:[%s4808_s19 + $0x3ec] ss:$16 sps:$4 sm:$0xff]  }
 0x130   : > { %v5274_v16 = vadd.f32 %v811_v13, %v5231_v44  ;;  %v813_v19 = vpop.f32.mrb[1].mxu0  ;;  %v1002_v21 = vpop.f32.mrb[0].mxu1  ;;  %v4560_v13 = vld [vmem:[%s4808_s19 + $0x3e0] ss:$16 sps:$4 sm:$0xff]  }
 0x131   : > { %v5277_v22 = vadd.f32 %v813_v19, %v5231_v44  ;;  %v5280_v23 = vadd.f32 %v1002_v21, %v5231_v44  ;;  %v1004_v24 = vpop.f32.mrb[1].mxu1  ;;  %v4563_v19 = vld [vmem:[%s4808_s19 + $0x3e8] ss:$16 sps:$4 sm:$0xff]   ;;  %v4647_v21 = vmov 0.0   ;;  %s4588_s19 = scalar_lea.vmem %s4587_s18, 512 }
 0x132   : > { %v5284_v26 = vadd.f32 %v1004_v24, %v5231_v44  ;;  %p4590_p1 = scmp.lt.s32.totalorder %s4588_s19, %s4582_s17 }
 0x133   : > { %v817_v31 = vpop.f32.mrb[2].mxu0 }
 0x134   : > { %v5292_v33 = vadd.f32 %v817_v31, %v5239_v47  ;;  %v819_v34 = vpop.f32.mrb[3].mxu0  ;;  %v1008_v35 = vpop.f32.mrb[2].mxu1  ;;  %p4591_p2 = por %p4590_p1, %p4589_p0 }
 0x135   : > { %2172 = vmatpush1.bf16.xpose.msra.mxu0 %v4536_v25  ;;  %v5297_v36 = vadd.f32 %v819_v34, %v5239_v47  ;;  %v5300_v37 = vadd.f32 %v1008_v35, %v5239_v47  ;;  %v1010_v38 = vpop.f32.mrb[3].mxu1 }
 0x136   : > { %2225 = vmatpush1.bf16.xpose.msra.mxu1 %v4539_v27  ;;  %2173 = vmatprep.subr.bf16.mxu0 %v4544_v28  ;;  %v5303_v39 = vadd.f32 %v1010_v38, %v5239_v47  ;;  %v402_v47 = vpop.permute.xlu1 %401  ;;  %p4592_p3 = pnand %p4591_p2, %p4585_p13 }
 0x137   : > { %2226 = vmatprep.subr.bf16.mxu1 %v4547_v30  ;;  %v823_v40 = vpop.f32.mrb[4].mxu0 }
 0x138   : > { %v5305_v42 = vadd.f32 %v823_v40, %v397_v29  ;;  %v825_v43 = vpop.f32.mrb[5].mxu0  ;;  %v1014_v44 = vpop.f32.mrb[4].mxu1 }
 0x139   : > { %v5308_v45 = vadd.f32 %v825_v43, %v397_v29  ;;  %v5310_v0 = vadd.f32 %v1014_v44, %v397_v29  ;;  %v1016_v46 = vpop.f32.mrb[5].mxu1 }
 0x13a   : > { %v5314_v51 = vadd.f32 %v1016_v46, %v397_v29  ;;  %v5343_v24 = vpop.permute.xlu1 %411 }
 0x13b   : > { %v829_v53 = vpop.f32.mrb[6].mxu0 }
 0x13c   : > { %v5317_v55 = vadd.f32 %v829_v53, %v402_v47  ;;  %v831_v56 = vpop.f32.mrb[7].mxu0  ;;  %v1020_v57 = vpop.f32.mrb[6].mxu1 }
 0x13d   : > { %2174 = vmatpush1.bf16.xpose.msra.mxu0 %v4542_v1  ;;  %v5319_v58 = vadd.f32 %v831_v56, %v402_v47  ;;  %v5321_v60 = vadd.f32 %v1020_v57, %v402_v47  ;;  %v1022_v61 = vpop.f32.mrb[7].mxu1 }
 0x13e   : > { %2227 = vmatpush1.bf16.xpose.msra.mxu1 %v4545_v48  ;;  %2175 = vmatprep.subr.bf16.mxu0 %v4550_v50  ;;  %v5323_v62 = vadd.f32 %v1022_v61, %v402_v47  ;;  %v5345_v25 = vpop.permute.xlu1 %421 }
 0x13f   : > { %2228 = vmatprep.subr.bf16.mxu1 %v4553_v52 }
 0x145   : > { %2176 = vmatpush1.bf16.xpose.msra.mxu0 %v4548_v63 }
 0x146   : > { %2229 = vmatpush1.bf16.xpose.msra.mxu1 %v4551_v3  ;;  %2177 = vmatprep.subr.bf16.mxu0 %v4556_v4 }
 0x147   : > { %2230 = vmatprep.subr.bf16.mxu1 %v4559_v5 }
 0x14d   : > { %2178 = vmatpush1.bf16.xpose.msra.mxu0 %v4554_v6 }
 0x14e   : > { %2231 = vmatpush1.bf16.xpose.msra.mxu1 %v4557_v8  ;;  %2179 = vmatprep.subr.bf16.mxu0 %v4562_v9 }
 0x14f   : > { %2232 = vmatprep.subr.bf16.mxu1 %v4565_v12 }
 0x155   : > { %2180 = vmatpush1.bf16.xpose.msra.mxu0 %v4560_v13 }
 0x156   : > { %2233 = vmatpush1.bf16.xpose.msra.mxu1 %v4563_v19 }
 0x15c   : > { %2182 = vmatmul.mubr.bf16.vlgmr.msra.gmra.mrb[52].mxu0 %v5154_v10  ;;  %v5347_v10 = vpop.permute.xlu1 %431 }
 0x15d   : > { %2235 = vmatmul.mubr.bf16.vlgmr.msra.gmra.mrb[52].mxu1 %v5159_v11  ;;  %2191 = vmatprep.mubr.bf16.mxu0 %v5166_v14 }
 0x15e   : > { %2244 = vmatprep.mubr.bf16.mxu1 %v5174_v17 }
 0x160   : > { %v5349_v11 = vpop.permute.xlu1 %441 }
 0x164   : > { %2192 = vmatmul.mubr.bf16.gmra.mrb[56].mxu0 %v5181_v18  ;;  %v5351_v14 = vpop.permute.xlu1 %451  ;;  %v487_v18 = vpop.permute.xlu0 %486 }
 0x165   : > { %2245 = vmatmul.mubr.bf16.gmra.mrb[56].mxu1 %v5188_v20  ;;  %2368 = vmatprep.mubr.f32.mxu0 %v4647_v21 }
 0x166   : > { %2457 = vmatprep.mubr.f32.mxu1 %v4647_v21 }
 0x168   : > { %v5353_v17 = vpop.permute.xlu1 %461 }
 0x16c   : > { %v5355_v20 = vpop.permute.xlu1 %471 }
 0x170   : > { %v5357_v40 = vpop.permute.xlu1 %481 }
 0x17f   : > { %v931_v27 = vpop.f32.mrb[40].mxu0 }
 0x180   : > { %v932_v28 = vadd.f32 %v931_v27, %v487_v18  ;;  %v933_v29 = vpop.f32.mrb[41].mxu0  ;;  %v1122_v30 = vpop.f32.mrb[40].mxu1 }
 0x181   : > { %v934_v31 = vadd.f32 %v933_v29, %v487_v18  ;;  %v1123_v34 = vadd.f32 %v1122_v30, %v487_v18  ;;  %v1124_v35 = vpop.f32.mrb[41].mxu1 }
 0x182   : > { %1207 = vst [vmem:[#allocation2 + $0x280] sm:$0x7] %v932_v28  ;;  %v1125_v38 = vadd.f32 %v1124_v35, %v487_v18 }
 0x183   : > { %1208 = vst [vmem:[#allocation2 + $0x288] sm:$0x7] %v934_v31  ;;  %1209 = vst [vmem:[#allocation2 + $0x290] sm:$0x7] %v1123_v34 }
 0x184   : > { %1210 = vst [vmem:[#allocation2 + $0x298] sm:$0x7] %v1125_v38 }
 0x1af   : > { %v2077_v41 = vpop.f32.mrb[44].mxu0 }
 0x1b0   : > { %v2078_v43 = vadd.f32 %v2077_v41, %v5274_v16  ;;  %v2130_v44 = vpop.f32.mrb[44].mxu1  ;;  %v2079_v1 = vpop.f32.mrb[45].mxu0 }
 0x1b1   : > { %v2080_v46 = vadd.f32 %v2079_v1, %v5277_v22  ;;  %v2132_v47 = vpop.f32.mrb[45].mxu1  ;;  %v2081_v48 = vpop.f32.mrb[46].mxu0 }
 0x1b2   : > { %v2131_v50 = vadd.f32 %v2130_v44, %v2078_v43  ;;  %v2082_v52 = vadd.f32 %v2081_v48, %v5292_v33  ;;  %v2134_v53 = vpop.f32.mrb[46].mxu1  ;;  %v2083_v56 = vpop.f32.mrb[47].mxu0  ;;  %v2273_v48 = vld [vmem:[%s5605_s4 + $0x10] sm:$0xff] }
 0x1b3   : > { %v2133_v57 = vadd.f32 %v2132_v47, %v2080_v46  ;;  %v2084_v61 = vadd.f32 %v2083_v56, %v5297_v36  ;;  %v2136_v63 = vpop.f32.mrb[47].mxu1 }
 0x1b4   : > { %v2135_v3 = vadd.f32 %v2134_v53, %v2082_v52  ;;  %v2255_v5 = vmax.f32 %v2131_v50, 0.0  ;;  %v2274_v50 = vld [vmem:[%s5605_s4 + $0x18] sm:$0xff] }
 0x1b5   : > { %v2137_v4 = vadd.f32 %v2136_v63, %v2084_v61  ;;  %v2256_v16 = vmax.f32 %v2133_v57, 0.0 }
 0x1b6   : > { %v2259_v6 = vmax.f32 %v2135_v3, 0.0 }
 0x1b7   : > { %v2260_v8 = vmax.f32 %v2137_v4, 0.0  ;;  %v2087_v9 = vpop.f32.mrb[48].mxu0 }
 0x1b8   : > { %v3985_v12 = vpack.c.bf16 %v2259_v6, %v2255_v5  ;;  %v2088_v22 = vadd.f32 %v2087_v9, %v5305_v42  ;;  %v2089_v13 = vpop.f32.mrb[49].mxu0  ;;  %v2140_v19 = vpop.f32.mrb[48].mxu1 }
 0x1b9   : > { %v3983_v18 = vpack.c.bf16 %v2260_v8, %v2256_v16  ;;  %v2090_v33 = vadd.f32 %v2089_v13, %v5308_v45  ;;  %v2091_v27 = vpop.f32.mrb[50].mxu0  ;;  %v2142_v28 = vpop.f32.mrb[49].mxu1 }
 0x1ba   : > { %v2092_v36 = vadd.f32 %v2091_v27, %v5317_v55  ;;  %v2141_v29 = vadd.f32 %v2140_v19, %v2088_v22  ;;  %v2093_v30 = vpop.f32.mrb[51].mxu0  ;;  %v2144_v31 = vpop.f32.mrb[50].mxu1  ;;  %v2271_v55 = vld [vmem:[%s5605_s4] sm:$0xff] }
 0x1bb   : > { %v2094_v34 = vadd.f32 %v2093_v30, %v5319_v58  ;;  %v2143_v35 = vadd.f32 %v2142_v28, %v2090_v33  ;;  %3984 = vmatprep.subr.bf16.mxu0 %v3983_v18  ;;  %v2146_v38 = vpop.f32.mrb[51].mxu1  ;;  %v2272_v58 = vld [vmem:[%s5605_s4 + $0x8] sm:$0xff] }
 0x1bc   : > { %v2145_v41 = vadd.f32 %v2144_v31, %v2092_v36  ;;  %3986 = vmatpush1.bf16.msra.mxu0 %v3985_v12  ;;  %v2263_v43 = vmax.f32 %v2141_v29, 0.0 }
 0x1bd   : > { %v2147_v42 = vadd.f32 %v2146_v38, %v2094_v34  ;;  %v2264_v1 = vmax.f32 %v2143_v35, 0.0 }
 0x1be   : > { %v2267_v44 = vmax.f32 %v2145_v41, 0.0 }
 0x1bf   : > { %v2268_v46 = vmax.f32 %v2147_v42, 0.0 }
 0x1c0   : > { %v3989_v45 = vpack.c.bf16 %v2267_v44, %v2263_v43 }
 0x1c1   : > { %v3987_v47 = vpack.c.bf16 %v2268_v46, %v2264_v1 }
 0x1c3   : > { %3988 = vmatprep.subr.bf16.mxu0 %v3987_v47 }
 0x1c4   : > { %3990 = vmatpush1.bf16.msra.mxu0 %v3989_v45 }
 0x1c7   : > { %3698 = vmatmul.mubr.msk.f32.vlgmr.msra.gmra.mrb[8].mxu0 %vm2291_vm2, %v2271_v55 }
 0x1c8   : > { %2374 = vmatprep.mubr.f32.mxu0 %v4647_v21 }
 0x1cb   : > { %3699 = vmatmul.mubr.msk.f32.gmra.mrb[10].mxu0 %vm2291_vm2, %v2272_v58 }
 0x1cc   : > { %2380 = vmatprep.mubr.f32.mxu0 %v4647_v21 }
 0x1cf   : > { %3700 = vmatmul.mubr.msk.f32.gmra.mrb[12].mxu0 %vm2291_vm2, %v2273_v48 }
 0x1d0   : > { %2386 = vmatprep.mubr.f32.mxu0 %v4647_v21 }
 0x1d3   : > { %3701 = vmatmul.mubr.msk.f32.gmra.mrb[14].mxu0 %vm2291_vm2, %v2274_v50 }
 0x1d4   : > { %2594 = vmatprep.mubr.f32.mxu0 %v4647_v21 }
 0x22f   : > { %v2183_v52 = vpop.f32.mrb[52].mxu0 }
 0x230   : > { %v2184_v53 = vadd.f32 %v2183_v52, %v5280_v23  ;;  %v2236_v56 = vpop.f32.mrb[52].mxu1  ;;  %v2185_v57 = vpop.f32.mrb[53].mxu0 }
 0x231   : > { %v2186_v61 = vadd.f32 %v2185_v57, %v5284_v26  ;;  %v2238_v63 = vpop.f32.mrb[53].mxu1  ;;  %v2187_v3 = vpop.f32.mrb[54].mxu0 }
 0x232   : > { %v2237_v4 = vadd.f32 %v2236_v56, %v2184_v53  ;;  %v2188_v5 = vadd.f32 %v2187_v3, %v5300_v37  ;;  %v2240_v6 = vpop.f32.mrb[54].mxu1  ;;  %v2189_v16 = vpop.f32.mrb[55].mxu0 }
 0x233   : > { %v2239_v8 = vadd.f32 %v2238_v63, %v2186_v61  ;;  %v2190_v9 = vadd.f32 %v2189_v16, %v5303_v39  ;;  %v2242_v12 = vpop.f32.mrb[55].mxu1 }
 0x234   : > { %v2241_v22 = vadd.f32 %v2240_v6, %v2188_v5  ;;  %v2257_v19 = vmax.f32 %v2237_v4, 0.0 }
 0x235   : > { %v2243_v13 = vadd.f32 %v2242_v12, %v2190_v9  ;;  %v2258_v23 = vmax.f32 %v2239_v8, 0.0 }
 0x236   : > { %v2261_v18 = vmax.f32 %v2241_v22, 0.0 }
 0x237   : > { %v2262_v33 = vmax.f32 %v2243_v13, 0.0  ;;  %v2193_v27 = vpop.f32.mrb[56].mxu0 }
 0x238   : > { %v3993_v28 = vpack.c.bf16 %v2261_v18, %v2257_v19  ;;  %v2194_v26 = vadd.f32 %v2193_v27, %v5310_v0  ;;  %v2246_v36 = vpop.f32.mrb[56].mxu1  ;;  %v2195_v29 = vpop.f32.mrb[57].mxu0 }
 0x239   : > { %v3991_v30 = vpack.c.bf16 %v2262_v33, %v2258_v23  ;;  %v2196_v37 = vadd.f32 %v2195_v29, %v5314_v51  ;;  %v2248_v31 = vpop.f32.mrb[57].mxu1  ;;  %v2197_v34 = vpop.f32.mrb[58].mxu0  ;;  %v2498_v29 = vld [vmem:[%s5605_s4 + $0x20] sm:$0xff] }
 0x23a   : > { %v2247_v35 = vadd.f32 %v2246_v36, %v2194_v26  ;;  %v2198_v39 = vadd.f32 %v2197_v34, %v5321_v60  ;;  %v2250_v38 = vpop.f32.mrb[58].mxu1  ;;  %v2199_v41 = vpop.f32.mrb[59].mxu0 }
 0x23b   : > { %v2249_v42 = vadd.f32 %v2248_v31, %v2196_v37  ;;  %v2200_v43 = vadd.f32 %v2199_v41, %v5323_v62  ;;  %v2252_v44 = vpop.f32.mrb[59].mxu1  ;;  %3992 = vmatprep.subr.bf16.mxu1 %v3991_v30  ;;  %v2499_v30 = vld [vmem:[%s5605_s4 + $0x28] sm:$0xff]  ;;  %v2500_v37 = vld [vmem:[%s5605_s4 + $0x30] sm:$0xff]  ;;  %v2501_v31 = vld [vmem:[%s5605_s4 + $0x38] sm:$0xff] }
 0x23c   : > { %v2251_v1 = vadd.f32 %v2250_v38, %v2198_v39  ;;  %3994 = vmatpush1.bf16.msra.mxu1 %v3993_v28  ;;  %v2265_v46 = vmax.f32 %v2247_v35, 0.0 }
 0x23d   : > { %v2253_v0 = vadd.f32 %v2252_v44, %v2200_v43  ;;  %v2266_v47 = vmax.f32 %v2249_v42, 0.0 }
 0x23e   : > { %v2269_v45 = vmax.f32 %v2251_v1, 0.0 }
 0x23f   : > { %v2270_v52 = vmax.f32 %v2253_v0, 0.0 }
 0x240   : > { %v3997_v51 = vpack.c.bf16 %v2269_v45, %v2265_v46 }
 0x241   : > { %v3995_v53 = vpack.c.bf16 %v2270_v52, %v2266_v47 }
 0x243   : > { %3996 = vmatprep.subr.bf16.mxu1 %v3995_v53 }
 0x244   : > { %3998 = vmatpush1.bf16.msra.mxu1 %v3997_v51 }
 0x247   : > { %3702 = vmatmul.mubr.msk.f32.vlgmr.msra.gmra.mrb[8].mxu1 %vm2291_vm2, %v2271_v55 }
 0x248   : > { %2463 = vmatprep.mubr.f32.mxu1 %v4647_v21 }
 0x24b   : > { %3703 = vmatmul.mubr.msk.f32.gmra.mrb[10].mxu1 %vm2291_vm2, %v2272_v58 }
 0x24c   : > { %2469 = vmatprep.mubr.f32.mxu1 %v4647_v21 }
 0x24f   : > { %3704 = vmatmul.mubr.msk.f32.gmra.mrb[12].mxu1 %vm2291_vm2, %v2273_v48 }
 0x250   : > { %2475 = vmatprep.mubr.f32.mxu1 %v4647_v21 }
 0x253   : > { %3705 = vmatmul.mubr.msk.f32.gmra.mrb[14].mxu1 %vm2291_vm2, %v2274_v50 }
 0x254   : > { %2683 = vmatprep.mubr.f32.mxu1 %v4647_v21 }
 0x29a   : > { %v2370_v60 = vpop.f32.mrb[8].mxu0 }
 0x29b   : > { %v2372_v62 = vpop.f32.mrb[9].mxu0  ;;  %v4065_v56 = vadd.f32 %v2370_v60, %v5242_v49 }
 0x29c   : > { %v4068_v55 = vadd.f32 %v2372_v62, %v5242_v49 }
 0x29d   : > { %v2482_v3 = vmax.f32 %v4065_v56, 0.0 }
 0x29e   : > { %v2376_v57 = vpop.f32.mrb[10].mxu0  ;;  %v2483_v4 = vmax.f32 %v4068_v55, 0.0 }
 0x29f   : > { %v4071_v61 = vadd.f32 %v2376_v57, %v5343_v24  ;;  %v2378_v58 = vpop.f32.mrb[11].mxu0 }
 0x2a0   : > { %v4074_v63 = vadd.f32 %v2378_v58, %v5343_v24 }
 0x2a1   : > { %v2486_v48 = vmax.f32 %v4071_v61, 0.0 }
 0x2a2   : > { %v2487_v5 = vmax.f32 %v4074_v63, 0.0  ;;  %v2382_v6 = vpop.f32.mrb[12].mxu0 }
 0x2a3   : > { %v4001_v50 = vpack.c.bf16 %v2486_v48, %v2482_v3  ;;  %v2384_v16 = vpop.f32.mrb[13].mxu0  ;;  %v4077_v9 = vadd.f32 %v2382_v6, %v5248_v54 }
 0x2a4   : > { %v3999_v8 = vpack.c.bf16 %v2487_v5, %v2483_v4  ;;  %v4080_v12 = vadd.f32 %v2384_v16, %v5248_v54 }
 0x2a5   : > { %v2490_v23 = vmax.f32 %v4077_v9, 0.0 }
 0x2a6   : > { %v2388_v22 = vpop.f32.mrb[14].mxu0  ;;  %4000 = vmatprep.subr.bf16.mxu0 %v3999_v8  ;;  %v2491_v27 = vmax.f32 %v4080_v12, 0.0 }
 0x2a7   : > { %v4083_v13 = vadd.f32 %v2388_v22, %v5345_v25  ;;  %v2390_v19 = vpop.f32.mrb[15].mxu0  ;;  %4002 = vmatpush1.bf16.msra.mxu0 %v4001_v50 }
 0x2a8   : > { %v4086_v18 = vadd.f32 %v2390_v19, %v5345_v25 }
 0x2a9   : > { %v2494_v33 = vmax.f32 %v4083_v13, 0.0 }
 0x2aa   : > { %v2495_v28 = vmax.f32 %v4086_v18, 0.0 }
 0x2ab   : > { %v4005_v26 = vpack.c.bf16 %v2494_v33, %v2490_v23 }
 0x2ac   : > { %v4003_v36 = vpack.c.bf16 %v2495_v28, %v2491_v27 }
 0x2ae   : > { %4004 = vmatprep.subr.bf16.mxu0 %v4003_v36 }
 0x2af   : > { %4006 = vmatpush1.bf16.msra.mxu0 %v4005_v26 }
 0x2b2   : > { %3706 = vmatmul.mubr.msk.f32.vlgmr.msra.gmra.mrb[16].mxu0 %vm2291_vm2, %v2498_v29 }
 0x2b3   : > { %2600 = vmatprep.mubr.f32.mxu0 %v4647_v21 }
 0x2b6   : > { %3707 = vmatmul.mubr.msk.f32.gmra.mrb[18].mxu0 %vm2291_vm2, %v2499_v30 }
 0x2b7   : > { %2606 = vmatprep.mubr.f32.mxu0 %v4647_v21 }
 0x2ba   : > { %3708 = vmatmul.mubr.msk.f32.gmra.mrb[20].mxu0 %vm2291_vm2, %v2500_v37 }
 0x2bb   : > { %2612 = vmatprep.mubr.f32.mxu0 %v4647_v21 }
 0x2be   : > { %3709 = vmatmul.mubr.msk.f32.gmra.mrb[22].mxu0 %vm2291_vm2, %v2501_v31 }
 0x2bf   : > { %2820 = vmatprep.mubr.f32.mxu0 %v4647_v21 }
 0x31a   : > { %v2459_v34 = vpop.f32.mrb[8].mxu1 }
 0x31b   : > { %v2461_v35 = vpop.f32.mrb[9].mxu1  ;;  %v4161_v39 = vadd.f32 %v2459_v34, %v5242_v49 }
 0x31c   : > { %v4164_v38 = vadd.f32 %v2461_v35, %v5242_v49 }
 0x31d   : > { %v2484_v1 = vmax.f32 %v4161_v39, 0.0 }
 0x31e   : > { %v2465_v41 = vpop.f32.mrb[10].mxu1  ;;  %v2485_v46 = vmax.f32 %v4164_v38, 0.0 }
 0x31f   : > { %v4167_v42 = vadd.f32 %v2465_v41, %v5343_v24  ;;  %v2467_v43 = vpop.f32.mrb[11].mxu1  ;;  %v2724_v41 = vld [vmem:[%s5605_s4 + $0x40] sm:$0xff] }
 0x320   : > { %v4170_v44 = vadd.f32 %v2467_v43, %v5343_v24  ;;  %v2726_v43 = vld [vmem:[%s5605_s4 + $0x50] sm:$0xff] }
 0x321   : > { %v2488_v0 = vmax.f32 %v4167_v42, 0.0  ;;  %v2725_v42 = vld [vmem:[%s5605_s4 + $0x48] sm:$0xff] }
 0x322   : > { %v2489_v45 = vmax.f32 %v4170_v44, 0.0  ;;  %v2471_v47 = vpop.f32.mrb[12].mxu1  ;;  %v2727_v44 = vld [vmem:[%s5605_s4 + $0x58] sm:$0xff] }
 0x323   : > { %v4009_v52 = vpack.c.bf16 %v2488_v0, %v2484_v1  ;;  %v2473_v51 = vpop.f32.mrb[13].mxu1  ;;  %v4173_v60 = vadd.f32 %v2471_v47, %v5248_v54 }
 0x324   : > { %v4007_v53 = vpack.c.bf16 %v2489_v45, %v2485_v46  ;;  %v4176_v62 = vadd.f32 %v2473_v51, %v5248_v54 }
 0x325   : > { %v2492_v57 = vmax.f32 %v4173_v60, 0.0 }
 0x326   : > { %v2477_v56 = vpop.f32.mrb[14].mxu1  ;;  %4008 = vmatprep.subr.bf16.mxu1 %v4007_v53  ;;  %v2493_v58 = vmax.f32 %v4176_v62, 0.0 }
 0x327   : > { %v4179_v49 = vadd.f32 %v2477_v56, %v5345_v25  ;;  %v2479_v55 = vpop.f32.mrb[15].mxu1  ;;  %4010 = vmatpush1.bf16.msra.mxu1 %v4009_v52 }
 0x328   : > { %v4182_v24 = vadd.f32 %v2479_v55, %v5345_v25 }
 0x329   : > { %v2496_v61 = vmax.f32 %v4179_v49, 0.0 }
 0x32a   : > { %v2497_v63 = vmax.f32 %v4182_v24, 0.0 }
 0x32b   : > { %v4013_v3 = vpack.c.bf16 %v2496_v61, %v2492_v57 }
 0x32c   : > { %v4011_v48 = vpack.c.bf16 %v2497_v63, %v2493_v58 }
 0x32e   : > { %4012 = vmatprep.subr.bf16.mxu1 %v4011_v48 }
 0x32f   : > { %4014 = vmatpush1.bf16.msra.mxu1 %v4013_v3 }
 0x332   : > { %3710 = vmatmul.mubr.msk.f32.vlgmr.msra.gmra.mrb[16].mxu1 %vm2291_vm2, %v2498_v29 }
 0x333   : > { %2689 = vmatprep.mubr.f32.mxu1 %v4647_v21 }
 0x336   : > { %3711 = vmatmul.mubr.msk.f32.gmra.mrb[18].mxu1 %vm2291_vm2, %v2499_v30 }
 0x337   : > { %2695 = vmatprep.mubr.f32.mxu1 %v4647_v21 }
 0x33a   : > { %3712 = vmatmul.mubr.msk.f32.gmra.mrb[20].mxu1 %vm2291_vm2, %v2500_v37 }
 0x33b   : > { %2701 = vmatprep.mubr.f32.mxu1 %v4647_v21 }
 0x33e   : > { %3713 = vmatmul.mubr.msk.f32.gmra.mrb[22].mxu1 %vm2291_vm2, %v2501_v31 }
 0x33f   : > { %2909 = vmatprep.mubr.f32.mxu1 %v4647_v21 }
 0x385   : > { %v2596_v54 = vpop.f32.mrb[16].mxu0 }
 0x386   : > { %v2598_v25 = vpop.f32.mrb[17].mxu0  ;;  %v4089_v4 = vadd.f32 %v2596_v54, %v5254_v59 }
 0x387   : > { %v4092_v5 = vadd.f32 %v2598_v25, %v5254_v59 }
 0x388   : > { %v2708_v9 = vmax.f32 %v4089_v4, 0.0 }
 0x389   : > { %v2602_v6 = vpop.f32.mrb[18].mxu0  ;;  %v2709_v22 = vmax.f32 %v4092_v5, 0.0 }
 0x38a   : > { %v4095_v50 = vadd.f32 %v2602_v6, %v5347_v10  ;;  %v2604_v16 = vpop.f32.mrb[19].mxu0 }
 0x38b   : > { %v4098_v8 = vadd.f32 %v2604_v16, %v5347_v10 }
 0x38c   : > { %v2712_v12 = vmax.f32 %v4095_v50, 0.0 }
 0x38d   : > { %v2713_v13 = vmax.f32 %v4098_v8, 0.0  ;;  %v2608_v19 = vpop.f32.mrb[20].mxu0 }
 0x38e   : > { %v4017_v18 = vpack.c.bf16 %v2712_v12, %v2708_v9  ;;  %v2610_v23 = vpop.f32.mrb[21].mxu0  ;;  %v4101_v27 = vadd.f32 %v2608_v19, %v5260_v2 }
 0x38f   : > { %v4015_v33 = vpack.c.bf16 %v2713_v13, %v2709_v22  ;;  %v4104_v28 = vadd.f32 %v2610_v23, %v5260_v2 }
 0x390   : > { %v2716_v37 = vmax.f32 %v4101_v27, 0.0 }
 0x391   : > { %v2614_v26 = vpop.f32.mrb[22].mxu0  ;;  %4016 = vmatprep.subr.bf16.mxu0 %v4015_v33  ;;  %v2717_v34 = vmax.f32 %v4104_v28, 0.0 }
 0x392   : > { %v4107_v36 = vadd.f32 %v2614_v26, %v5349_v11  ;;  %v2616_v29 = vpop.f32.mrb[23].mxu0  ;;  %4018 = vmatpush1.bf16.msra.mxu0 %v4017_v18 }
 0x393   : > { %v4110_v30 = vadd.f32 %v2616_v29, %v5349_v11 }
 0x394   : > { %v2720_v31 = vmax.f32 %v4107_v36, 0.0 }
 0x395   : > { %v2721_v35 = vmax.f32 %v4110_v30, 0.0 }
 0x396   : > { %v4021_v39 = vpack.c.bf16 %v2720_v31, %v2716_v37 }
 0x397   : > { %v4019_v38 = vpack.c.bf16 %v2721_v35, %v2717_v34 }
 0x399   : > { %4020 = vmatprep.subr.bf16.mxu0 %v4019_v38 }
 0x39a   : > { %4022 = vmatpush1.bf16.msra.mxu0 %v4021_v39 }
 0x39d   : > { %3714 = vmatmul.mubr.msk.f32.vlgmr.msra.gmra.mrb[24].mxu0 %vm2291_vm2, %v2724_v41 }
 0x39e   : > { %2826 = vmatprep.mubr.f32.mxu0 %v4647_v21 }
 0x3a1   : > { %3715 = vmatmul.mubr.msk.f32.gmra.mrb[26].mxu0 %vm2291_vm2, %v2725_v42 }
 0x3a2   : > { %2832 = vmatprep.mubr.f32.mxu0 %v4647_v21 }
 0x3a5   : > { %3716 = vmatmul.mubr.msk.f32.gmra.mrb[28].mxu0 %vm2291_vm2, %v2726_v43 }
 0x3a6   : > { %2838 = vmatprep.mubr.f32.mxu0 %v4647_v21 }
 0x3a9   : > { %3717 = vmatmul.mubr.msk.f32.gmra.mrb[30].mxu0 %vm2291_vm2, %v2727_v44 }
 0x3aa   : > { %3046 = vmatprep.mubr.f32.mxu0 %v4647_v21 }
 0x405   : > { %v2685_v1 = vpop.f32.mrb[16].mxu1 }
 0x406   : > { %v2687_v0 = vpop.f32.mrb[17].mxu1  ;;  %v4185_v46 = vadd.f32 %v2685_v1, %v5254_v59  ;;  %v2950_v1 = vld [vmem:[%s5605_s4 + $0x60] sm:$0xff] }
 0x407   : > { %v4188_v45 = vadd.f32 %v2687_v0, %v5254_v59  ;;  %v2951_v0 = vld [vmem:[%s5605_s4 + $0x68] sm:$0xff] }
 0x408   : > { %v2710_v60 = vmax.f32 %v4185_v46, 0.0  ;;  %v2952_v46 = vld [vmem:[%s5605_s4 + $0x70] sm:$0xff] }
 0x409   : > { %v2691_v47 = vpop.f32.mrb[18].mxu1  ;;  %v2711_v56 = vmax.f32 %v4188_v45, 0.0  ;;  %v2953_v45 = vld [vmem:[%s5605_s4 + $0x78] sm:$0xff] }
 0x40a   : > { %v4191_v52 = vadd.f32 %v2691_v47, %v5347_v10  ;;  %v2693_v51 = vpop.f32.mrb[19].mxu1 }
 0x40b   : > { %v4194_v53 = vadd.f32 %v2693_v51, %v5347_v10 }
 0x40c   : > { %v2714_v62 = vmax.f32 %v4191_v52, 0.0 }
 0x40d   : > { %v2715_v49 = vmax.f32 %v4194_v53, 0.0  ;;  %v2697_v55 = vpop.f32.mrb[20].mxu1 }
 0x40e   : > { %v4025_v24 = vpack.c.bf16 %v2714_v62, %v2710_v60  ;;  %v2699_v57 = vpop.f32.mrb[21].mxu1  ;;  %v4197_v58 = vadd.f32 %v2697_v55, %v5260_v2 }
 0x40f   : > { %v4023_v61 = vpack.c.bf16 %v2715_v49, %v2711_v56  ;;  %v4200_v63 = vadd.f32 %v2699_v57, %v5260_v2 }
 0x410   : > { %v2718_v54 = vmax.f32 %v4197_v58, 0.0 }
 0x411   : > { %v2703_v3 = vpop.f32.mrb[22].mxu1  ;;  %4024 = vmatprep.subr.bf16.mxu1 %v4023_v61  ;;  %v2719_v4 = vmax.f32 %v4200_v63, 0.0 }
 0x412   : > { %v4203_v59 = vadd.f32 %v2703_v3, %v5349_v11  ;;  %v2705_v48 = vpop.f32.mrb[23].mxu1  ;;  %4026 = vmatpush1.bf16.msra.mxu1 %v4025_v24 }
 0x413   : > { %v4206_v10 = vadd.f32 %v2705_v48, %v5349_v11 }
 0x414   : > { %v2722_v25 = vmax.f32 %v4203_v59, 0.0 }
 0x415   : > { %v2723_v5 = vmax.f32 %v4206_v10, 0.0 }
 0x416   : > { %v4029_v6 = vpack.c.bf16 %v2722_v25, %v2718_v54 }
 0x417   : > { %v4027_v50 = vpack.c.bf16 %v2723_v5, %v2719_v4 }
 0x419   : > { %4028 = vmatprep.subr.bf16.mxu1 %v4027_v50 }
 0x41a   : > { %4030 = vmatpush1.bf16.msra.mxu1 %v4029_v6 }
 0x41d   : > { %3718 = vmatmul.mubr.msk.f32.vlgmr.msra.gmra.mrb[24].mxu1 %vm2291_vm2, %v2724_v41 }
 0x41e   : > { %2915 = vmatprep.mubr.f32.mxu1 %v4647_v21 }
 0x421   : > { %3719 = vmatmul.mubr.msk.f32.gmra.mrb[26].mxu1 %vm2291_vm2, %v2725_v42 }
 0x422   : > { %2921 = vmatprep.mubr.f32.mxu1 %v4647_v21 }
 0x425   : > { %3720 = vmatmul.mubr.msk.f32.gmra.mrb[28].mxu1 %vm2291_vm2, %v2726_v43 }
 0x426   : > { %2927 = vmatprep.mubr.f32.mxu1 %v4647_v21 }
 0x429   : > { %3721 = vmatmul.mubr.msk.f32.gmra.mrb[30].mxu1 %vm2291_vm2, %v2727_v44 }
 0x42a   : > { %3135 = vmatprep.mubr.f32.mxu1 %v4647_v21 }
 0x470   : > { %v2822_v2 = vpop.f32.mrb[24].mxu0 }
 0x471   : > { %v2824_v11 = vpop.f32.mrb[25].mxu0  ;;  %v4113_v16 = vadd.f32 %v2822_v2, %v5266_v7 }
 0x472   : > { %v4116_v8 = vadd.f32 %v2824_v11, %v5266_v7 }
 0x473   : > { %v2934_v19 = vmax.f32 %v4113_v16, 0.0 }
 0x474   : > { %v2828_v9 = vpop.f32.mrb[26].mxu0  ;;  %v2935_v23 = vmax.f32 %v4116_v8, 0.0 }
 0x475   : > { %v4119_v12 = vadd.f32 %v2828_v9, %v5351_v14  ;;  %v2830_v22 = vpop.f32.mrb[27].mxu0 }
 0x476   : > { %v4122_v13 = vadd.f32 %v2830_v22, %v5351_v14 }
 0x477   : > { %v2938_v18 = vmax.f32 %v4119_v12, 0.0 }
 0x478   : > { %v2939_v33 = vmax.f32 %v4122_v13, 0.0  ;;  %v2834_v27 = vpop.f32.mrb[28].mxu0 }
 0x479   : > { %v4033_v28 = vpack.c.bf16 %v2938_v18, %v2934_v19  ;;  %v2836_v26 = vpop.f32.mrb[29].mxu0  ;;  %v4125_v29 = vadd.f32 %v2834_v27, %v5271_v15 }
 0x47a   : > { %v4031_v36 = vpack.c.bf16 %v2939_v33, %v2935_v23  ;;  %v4128_v30 = vadd.f32 %v2836_v26, %v5271_v15 }
 0x47b   : > { %v2942_v39 = vmax.f32 %v4125_v29, 0.0 }
 0x47c   : > { %v2840_v37 = vpop.f32.mrb[30].mxu0  ;;  %4032 = vmatprep.subr.bf16.mxu0 %v4031_v36  ;;  %v2943_v41 = vmax.f32 %v4128_v30, 0.0  ;;  %v4148_v36 = vld [vmem:[#allocation2 + $0x240] sm:$0xff]  ;;  %v4151_v30 = vld [vmem:[#allocation2 + $0x248] sm:$0xff] }
 0x47d   : > { %v4131_v31 = vadd.f32 %v2840_v37, %v5353_v17  ;;  %v2842_v34 = vpop.f32.mrb[31].mxu0  ;;  %4034 = vmatpush1.bf16.msra.mxu0 %v4033_v28 }
 0x47e   : > { %v4134_v35 = vadd.f32 %v2842_v34, %v5353_v17 }
 0x47f   : > { %v2946_v38 = vmax.f32 %v4131_v31, 0.0 }
 0x480   : > { %v2947_v42 = vmax.f32 %v4134_v35, 0.0 }
 0x481   : > { %v4037_v43 = vpack.c.bf16 %v2946_v38, %v2942_v39 }
 0x482   : > { %v4035_v44 = vpack.c.bf16 %v2947_v42, %v2943_v41 }
 0x484   : > { %4036 = vmatprep.subr.bf16.mxu0 %v4035_v44 }
 0x485   : > { %4038 = vmatpush1.bf16.msra.mxu0 %v4037_v43 }
 0x488   : > { %3722 = vmatmul.mubr.msk.f32.vlgmr.msra.gmra.mrb[32].mxu0 %vm2291_vm2, %v2950_v1 }
 0x489   : > { %3052 = vmatprep.mubr.f32.mxu0 %v4647_v21 }
 0x48c   : > { %3723 = vmatmul.mubr.msk.f32.gmra.mrb[34].mxu0 %vm2291_vm2, %v2951_v0 }
 0x48d   : > { %3058 = vmatprep.mubr.f32.mxu0 %v4647_v21 }
 0x490   : > { %3724 = vmatmul.mubr.msk.f32.gmra.mrb[36].mxu0 %vm2291_vm2, %v2952_v46 }
 0x491   : > { %3064 = vmatprep.mubr.f32.mxu0 %v4647_v21 }
 0x494   : > { %3725 = vmatmul.mubr.msk.f32.gmra.mrb[38].mxu0 %vm2291_vm2, %v2953_v45 }
 0x495   : > { %3248 = vmatprep.mubr.f32.mxu0 %v4647_v21 }
 0x4f0   : > { %v2911_v47 = vpop.f32.mrb[24].mxu1 }
 0x4f1   : > { %v2913_v52 = vpop.f32.mrb[25].mxu1  ;;  %v4209_v51 = vadd.f32 %v2911_v47, %v5266_v7 }
 0x4f2   : > { %v4212_v53 = vadd.f32 %v2913_v52, %v5266_v7  ;;  %v4235_v52 = vld [vmem:[#allocation2 + $0x218] sm:$0xff] }
 0x4f3   : > { %v2936_v55 = vmax.f32 %v4209_v51, 0.0 }
 0x4f4   : > { %v2917_v60 = vpop.f32.mrb[26].mxu1  ;;  %v2937_v57 = vmax.f32 %v4212_v53, 0.0 }
 0x4f5   : > { %v4215_v62 = vadd.f32 %v2917_v60, %v5351_v14  ;;  %v2919_v56 = vpop.f32.mrb[27].mxu1 }
 0x4f6   : > { %v4218_v49 = vadd.f32 %v2919_v56, %v5351_v14 }
 0x4f7   : > { %v2940_v24 = vmax.f32 %v4215_v62, 0.0 }
 0x4f8   : > { %v2941_v61 = vmax.f32 %v4218_v49, 0.0  ;;  %v2923_v58 = vpop.f32.mrb[28].mxu1 }
 0x4f9   : > { %v4041_v63 = vpack.c.bf16 %v2940_v24, %v2936_v55  ;;  %v2925_v3 = vpop.f32.mrb[29].mxu1  ;;  %v4221_v48 = vadd.f32 %v2923_v58, %v5271_v15 }
 0x4fa   : > { %v4039_v59 = vpack.c.bf16 %v2941_v61, %v2937_v57  ;;  %v4224_v10 = vadd.f32 %v2925_v3, %v5271_v15 }
 0x4fb   : > { %v2944_v4 = vmax.f32 %v4221_v48, 0.0 }
 0x4fc   : > { %v2929_v54 = vpop.f32.mrb[30].mxu1  ;;  %4040 = vmatprep.subr.bf16.mxu1 %v4039_v59  ;;  %v2945_v6 = vmax.f32 %v4224_v10, 0.0  ;;  %v4244_v59 = vld [vmem:[#allocation2 + $0x250] sm:$0xff]  ;;  %v4247_v10 = vld [vmem:[#allocation2 + $0x258] sm:$0xff] }
 0x4fd   : > { %v4227_v7 = vadd.f32 %v2929_v54, %v5353_v17  ;;  %v2931_v25 = vpop.f32.mrb[31].mxu1  ;;  %4042 = vmatpush1.bf16.msra.mxu1 %v4041_v63 }
 0x4fe   : > { %v4230_v14 = vadd.f32 %v2931_v25, %v5353_v17 }
 0x4ff   : > { %v2948_v5 = vmax.f32 %v4227_v7, 0.0 }
 0x500   : > { %v2949_v50 = vmax.f32 %v4230_v14, 0.0 }
 0x501   : > { %v4045_v2 = vpack.c.bf16 %v2948_v5, %v2944_v4 }
 0x502   : > { %v4043_v11 = vpack.c.bf16 %v2949_v50, %v2945_v6 }
 0x504   : > { %4044 = vmatprep.subr.bf16.mxu1 %v4043_v11 }
 0x505   : > { %4046 = vmatpush1.bf16.msra.mxu1 %v4045_v2 }
 0x508   : > { %3726 = vmatmul.mubr.msk.f32.vlgmr.msra.gmra.mrb[32].mxu1 %vm2291_vm2, %v2950_v1  ;;  %v3176_v1 = vld [vmem:[%s5605_s4 + $0x80] sm:$0x7] }
 0x509   : > { %3141 = vmatprep.mubr.f32.mxu1 %v4647_v21 }
 0x50c   : > { %3727 = vmatmul.mubr.msk.f32.gmra.mrb[34].mxu1 %vm2291_vm2, %v2951_v0 }
 0x50d   : > { %3147 = vmatprep.mubr.f32.mxu1 %v4647_v21 }
 0x510   : > { %3728 = vmatmul.mubr.msk.f32.gmra.mrb[36].mxu1 %vm2291_vm2, %v2952_v46 }
 0x511   : > { %3153 = vmatprep.mubr.f32.mxu1 %v4647_v21 }
 0x514   : > { %3729 = vmatmul.mubr.msk.f32.gmra.mrb[38].mxu1 %vm2291_vm2, %v2953_v45  ;;  %v4232_v45 = vld [vmem:[#allocation2 + $0x210] sm:$0xff] }
 0x515   : > { %3319 = vmatprep.mubr.f32.mxu1 %v4647_v21 }
 0x55b   : > { %v3048_v15 = vpop.f32.mrb[32].mxu0 }
 0x55c   : > { %v3050_v17 = vpop.f32.mrb[33].mxu0  ;;  %v4137_v16 = vadd.f32 %v3048_v15, %v5289_v32  ;;  %v3177_v15 = vld [vmem:[#allocation2 + $0x280] sm:$0x7] }
 0x55d   : > { %v4140_v8 = vadd.f32 %v3050_v17, %v5289_v32 }
 0x55e   : > { %v3160_v19 = vmax.f32 %v4137_v16, 0.0 }
 0x55f   : > { %v3054_v9 = vpop.f32.mrb[34].mxu0  ;;  %v3161_v23 = vmax.f32 %v4140_v8, 0.0  ;;  %v3178_v8 = vld [vmem:[#allocation2 + $0x288] sm:$0x7] }
 0x560   : > { %v4143_v12 = vadd.f32 %v3054_v9, %v5355_v20  ;;  %v3056_v22 = vpop.f32.mrb[35].mxu0 }
 0x561   : > { %v4146_v13 = vadd.f32 %v3056_v22, %v5355_v20 }
 0x562   : > { %v3164_v18 = vmax.f32 %v4143_v12, 0.0 }
 0x563   : > { %v3165_v33 = vmax.f32 %v4146_v13, 0.0  ;;  %v3060_v27 = vpop.f32.mrb[36].mxu0 }
 0x564   : > { %v4049_v28 = vpack.c.bf16 %v3164_v18, %v3160_v19  ;;  %v3062_v26 = vpop.f32.mrb[37].mxu0  ;;  %v4149_v29 = vadd.f32 %v4148_v36, %v3060_v27  ;;  %v3179_v36 = vld [vmem:[#allocation2 + $0x290] sm:$0x7] }
 0x565   : > { %v4047_v21 = vpack.c.bf16 %v3165_v33, %v3161_v23  ;;  %v4152_v37 = vadd.f32 %v4151_v30, %v3062_v26 }
 0x566   : > { %v3168_v39 = vmax.f32 %v4149_v29, 0.0 }
 0x567   : > { %v3066_v31 = vpop.f32.mrb[38].mxu0  ;;  %4048 = vmatprep.subr.bf16.mxu0 %v4047_v21  ;;  %v3169_v41 = vmax.f32 %v4152_v37, 0.0  ;;  %v3180_v37 = vld [vmem:[#allocation2 + $0x298] sm:$0x7] }
 0x568   : > { %v4155_v32 = vadd.f32 %v3066_v31, %v5357_v40  ;;  %v3068_v34 = vpop.f32.mrb[39].mxu0  ;;  %4050 = vmatpush1.bf16.msra.mxu0 %v4049_v28 }
 0x569   : > { %v4158_v35 = vadd.f32 %v3068_v34, %v5357_v40 }
 0x56a   : > { %v3172_v38 = vmax.f32 %v4155_v32, 0.0 }
 0x56b   : > { %v3173_v42 = vmax.f32 %v4158_v35, 0.0 }
 0x56c   : > { %v4053_v43 = vpack.c.bf16 %v3172_v38, %v3168_v39 }
 0x56d   : > { %v4051_v44 = vpack.c.bf16 %v3173_v42, %v3169_v41 }
 0x56f   : > { %4052 = vmatprep.subr.bf16.mxu0 %v4051_v44 }
 0x570   : > { %4054 = vmatpush1.bf16.msra.mxu0 %v4053_v43 }
 0x573   : > { %3730 = vmatmul.mubr.msk.f32.vlgmr.msra.gmra.mrb[42].mxu0 %vm2291_vm2, %v3176_v1 }
 0x5db   : > { %v3137_v0 = vpop.f32.mrb[32].mxu1 }
 0x5dc   : > { %v3139_v46 = vpop.f32.mrb[33].mxu1  ;;  %v4233_v47 = vadd.f32 %v4232_v45, %v3137_v0 }
 0x5dd   : > { %v4236_v51 = vadd.f32 %v4235_v52, %v3139_v46 }
 0x5de   : > { %v3162_v49 = vmax.f32 %v4233_v47, 0.0 }
 0x5df   : > { %v3143_v53 = vpop.f32.mrb[34].mxu1  ;;  %v3163_v24 = vmax.f32 %v4236_v51, 0.0 }
 0x5e0   : > { %v4239_v60 = vadd.f32 %v3143_v53, %v5355_v20  ;;  %v3145_v62 = vpop.f32.mrb[35].mxu1 }
 0x5e1   : > { %v4242_v56 = vadd.f32 %v3145_v62, %v5355_v20 }
 0x5e2   : > { %v3166_v55 = vmax.f32 %v4239_v60, 0.0 }
 0x5e3   : > { %v3167_v57 = vmax.f32 %v4242_v56, 0.0  ;;  %v3149_v61 = vpop.f32.mrb[36].mxu1 }
 0x5e4   : > { %v4057_v58 = vpack.c.bf16 %v3166_v55, %v3162_v49  ;;  %v3151_v63 = vpop.f32.mrb[37].mxu1  ;;  %v4245_v48 = vadd.f32 %v4244_v59, %v3149_v61 }
 0x5e5   : > { %v4055_v3 = vpack.c.bf16 %v3167_v57, %v3163_v24  ;;  %v4248_v54 = vadd.f32 %v4247_v10, %v3151_v63 }
 0x5e6   : > { %v3170_v4 = vmax.f32 %v4245_v48, 0.0 }
 0x5e7   : > { %v3155_v7 = vpop.f32.mrb[38].mxu1  ;;  %4056 = vmatprep.subr.bf16.mxu1 %v4055_v3  ;;  %v3171_v6 = vmax.f32 %v4248_v54, 0.0 }
 0x5e8   : > { %v4251_v25 = vadd.f32 %v3155_v7, %v5357_v40  ;;  %v3157_v14 = vpop.f32.mrb[39].mxu1  ;;  %4058 = vmatpush1.bf16.msra.mxu1 %v4057_v58 }
 0x5e9   : > { %v4254_v20 = vadd.f32 %v3157_v14, %v5357_v40 }
 0x5ea   : > { %v3174_v5 = vmax.f32 %v4251_v25, 0.0 }
 0x5eb   : > { %v3175_v50 = vmax.f32 %v4254_v20, 0.0 }
 0x5ec   : > { %v4061_v2 = vpack.c.bf16 %v3174_v5, %v3170_v4 }
 0x5ed   : > { %v4059_v11 = vpack.c.bf16 %v3175_v50, %v3171_v6 }
 0x5ef   : > { %4060 = vmatprep.subr.bf16.mxu1 %v4059_v11 }
 0x5f0   : > { %4062 = vmatpush1.bf16.msra.mxu1 %v4061_v2 }
 0x5f3   : > { %3731 = vmatmul.mubr.msk.f32.vlgmr.msra.gmra.mrb[42].mxu1 %vm2291_vm2, %v3176_v1 }
 0x646   : > { %v3250_v17 = vpop.f32.mrb[42].mxu0 }
 0x647   : > { %v3251_v16 = vadd.f32 %v3250_v17, %v3177_v15  ;;  %v3252_v9 = vpop.f32.mrb[43].mxu0 }
 0x648   : > { %v3253_v12 = vadd.f32 %v3252_v9, %v3178_v8 }
 0x649   : > { %v3326_v22 = vsub.f32 0.0, %v3251_v16 }
 0x64a   : > { %v3327_v40 = vsub.f32 0.0, %v3253_v12 }
 0x64b   : > { %v3330_v13 = vmul.f32 1.442695, %v3326_v22 }
 0x64c   : > { %v3332_v19 = vmul.f32 1.442695, %v3327_v40 }
 0x64d   : > { %4566 = vpow2.f32 %v3330_v13 }
 0x64e   : > { %4568 = vpow2.f32 %v3332_v19 }
 0x657   : > { %v4567_v18 = vpop.eup %4566 }
 0x658   : > { %v4569_v23 = vpop.eup %4568  ;;  %v3338_v33 = vadd.f32 1.0, %v4567_v18 }
 0x659   : > { %v3339_v27 = vadd.f32 1.0, %v4569_v23 }
 0x65a   : > { %4570 = vrcp.f32 %v3338_v33 }
 0x65b   : > { %4572 = vrcp.f32 %v3339_v27 }
 0x664   : > { %v4571_v28 = vpop.eup %4570 }
 0x665   : > { %v4573_v26 = vpop.eup %4572 }
 0x666   : > { %v3354_v21 = vcombine.low %v4571_v28, %v4573_v26 }
 0x668   : > { %3358 = vst [vmem:[%s263_s10] sm:$0x77] %v3354_v21 }
 0x6c6   : > { %v3321_v29 = vpop.f32.mrb[42].mxu1 }
 0x6c7   : > { %v3322_v30 = vadd.f32 %v3321_v29, %v3179_v36  ;;  %v3323_v31 = vpop.f32.mrb[43].mxu1 }
 0x6c8   : > { %v3324_v32 = vadd.f32 %v3323_v31, %v3180_v37 }
 0x6c9   : > { %v3328_v34 = vsub.f32 0.0, %v3322_v30 }
 0x6ca   : > { %v3329_v35 = vsub.f32 0.0, %v3324_v32 }
 0x6cb   : > { %v3334_v39 = vmul.f32 1.442695, %v3328_v34 }
 0x6cc   : > { %v3336_v38 = vmul.f32 1.442695, %v3329_v35 }
 0x6cd   : > { %4574 = vpow2.f32 %v3334_v39 }
 0x6ce   : > { %4576 = vpow2.f32 %v3336_v38 }
 0x6d7   : > { %v4575_v41 = vpop.eup %4574 }
 0x6d8   : > { %v4577_v42 = vpop.eup %4576  ;;  %v3340_v43 = vadd.f32 1.0, %v4575_v41 }
 0x6d9   : > { %v3341_v44 = vadd.f32 1.0, %v4577_v42 }
 0x6da   : > { %4578 = vrcp.f32 %v3340_v43 }
 0x6db   : > { %4580 = vrcp.f32 %v3341_v44 }
 0x6e4   : > { %v4579_v1 = vpop.eup %4578 }
 0x6e5   : > { %v4581_v0 = vpop.eup %4580 }
 0x6e6   : > { %v3355_v46 = vcombine.low %v4579_v1, %v4581_v0 }
 0x6e8   : > { %3359 = vst [vmem:[%s263_s10 + $0x8] sm:$0x77] %v3355_v46 }
 0x6e9   : > { %4595 = shalt.err (!%p4592_p3)
}
 0x6ea   : > { %s4596_s20 = scalar_lea.hbm %s5557_s15, 256  ;;  %s4600_s29 = scalar_lea.hbm %s5607_s6, 512 }
 0x6eb   : > { %p4597_p4 = scmp.ne.s32.totalorder %s5557_s15, %s4596_s20  ;;  %p4601_p9 = scmp.lt.u32.totalorder %s5557_s15, %s5607_s6 }
 0x6ec   : > { %p4602_p10 = scmp.lt.u32.totalorder %s4600_s29, %s4596_s20  ;;  %p4604_p12 = scmp.lt.u32.totalorder %s4596_s20, %s5557_s15 }
 0x6ed   : > { %p4598_p7 = pnand %p4597_p4, %p4722_p5 }
 0x6ee   : > { %p4603_p11 = por %p4602_p10, %p4601_p9 }
 0x6ef   : > { %p4599_p8 = pneg %p4598_p7 }
 0x6f0   : > { %p4605_p13 = por %p4604_p12, %p4603_p11 }
 0x6f2   : > { %p4606_p0 = pnand %p4605_p13, %p4599_p8 }
 0x6f4   : > { %4609 = shalt.err (!%p4606_p0)
}
 0x6f5   : > { %4319 = dma.vmem_to_hbm [thread:$0]  (%p4722_p5), %s5559_s12, 256, %s5557_s15, %s3361_s16  }
 0x6f6 PF: > { %p4325_p1 = scmp.ge.s32.totalorder %s4644_s24, 2  ;;  %s3387_s11 = sand.u32 1, %s4632_s21  }
 0x6f7   : > { %s3388_s13 = scalar_lea.sflag [#allocation4], %s3387_s11 }
 0x6f8   : > { %p4322_p2 = pnand %p4325_p1, %p4726_p6 }
 0x6fa   : > { %4627 = dma.done.wait (!%p4322_p2), %s3388_s13, 256  }
 0x6fb   : > { %4629 = vsyncadd (!%p4322_p2), %s3388_s13, 4294967040  ;;  %p16_p3 = scmp.ge.s32.totalorder %s4709_s27, 4   ;;  %s5612_s21 = smov %s4636_s22 }
 0x6fc   : > { %s5613_s22 = smov %s4640_s23  ;;  %s5614_s23 = smov %s4720_s30 }
 0x6fd   : > { %s5615_s24 = smov %s4709_s27  ;;  %18 = sbr.rel (!%p16_p3) target bundleno = 3 (0x3), region = 82 }
 0x704   :  { %3393 = vsyncpa [#allocation4], 1 }
 0x705   :  { %3395 = vsyncpa [#allocation4 + $0x1], 1 }

</bundles_post_ra>
